<compile_context>
chip_gen: v5e
topology: v5e:2x2
jax: 0.10.0
libtpu: 0.0.40
codegen_flags: <defaults>
</compile_context>

<pallas_src>
import math

import jax
import jax.numpy as jnp
from jax.experimental import pallas as pl
from jax.experimental.pallas import tpu as pltpu

# ----------------------------- hyper-parameters ------------------------------
VOCAB_SIZE = 50
LABEL_SIZE = 10
FEATURE_DIM = 16
MODEL_DIM = 2 * FEATURE_DIM          # concat(word_embed, pred_embed) -> model_dim
FILTER_DIM = 64
LAYER_NUM = 2
NUM_HEADS = 2
HEAD_DIM = MODEL_DIM // NUM_HEADS
LABEL_SMOOTHING = 0.1
WORD_PAD_ID = 0

B = 2
S = 8

_CONF = 1.0 - LABEL_SMOOTHING
_LOW = LABEL_SMOOTHING / (LABEL_SIZE - 1)
_NORMALIZING = -(_CONF * math.log(_CONF)
                 + (LABEL_SIZE - 1) * _LOW * math.log(_LOW + 1e-20))

# ----------------- packed aux slab layout (one (72,128) f32 operand) ---------
ROWS_PER_LAYER = 6                       # ln1_g, ln1_b, ln2_g, ln2_b, b1, b2
ROW_FINAL_LN = LAYER_NUM * ROWS_PER_LAYER    # 12: lnf_g, 13: lnf_b, 14: proj_b
ROW_KEYMASK = 16                         # B rows  x S lanes : key-valid mask
ROW_WPT = 24                             # LABEL_SIZE rows x D : projection W^T
ROW_LABELS = 40                          # B*S rows x 1 lane : labels (as f32)
ROW_TOKMASK = 56                         # B*S rows x 1 lane : token loss mask
AUX_ROWS = 72
AUX_COLS = 128


# ------------------------------- kernel --------------------------------------
def _layer_norm(v, g, b):
    mu = jnp.mean(v, axis=-1, keepdims=True)
    var = jnp.mean((v - mu) ** 2, axis=-1, keepdims=True)
    return (v - mu) * jax.lax.rsqrt(var + 1e-6) * g + b


def deepattn_fused_kernel(x_ref, w_attn_ref, w_ffn_ref, aux_ref, loss_ref):
    x = x_ref[...]                                   # (B*S, D) f32 activations
    scale = HEAD_DIM ** -0.5

    # Key-padding additive bias rebuilt in-kernel from the valid mask row block
    # (saves a dedicated padded (B,1,S) operand + DMA).
    valid_keys = aux_ref[ROW_KEYMASK:ROW_KEYMASK + B, 0:S]         # (B, S)
    attn_bias = ((valid_keys - 1.0) * 1e9)[:, None, :]             # (B, 1, S)

    # -------------------- encoder layers (static unroll) ---------------------
    for l in range(LAYER_NUM):
        r = l * ROWS_PER_LAYER
        ln1_g = aux_ref[r + 0:r + 1, 0:MODEL_DIM]
        ln1_b = aux_ref[r + 1:r + 2, 0:MODEL_DIM]
        ln2_g = aux_ref[r + 2:r + 3, 0:MODEL_DIM]
        ln2_b = aux_ref[r + 3:r + 4, 0:MODEL_DIM]
        b1 = aux_ref[r + 4:r + 5, 0:FILTER_DIM]
        b2 = aux_ref[r + 5:r + 6, 0:MODEL_DIM]

        # ---------------- self-attention sub-layer (pre-norm) ----------------
        y = _layer_norm(x, ln1_g, ln1_b)
        attn_out = jnp.zeros_like(x)
        for h in range(NUM_HEADS):        # static unroll; weights pre-split per head
            q = jnp.dot(y, w_attn_ref[l, h, 0], preferred_element_type=jnp.float32)
            k = jnp.dot(y, w_attn_ref[l, h, 1], preferred_element_type=jnp.float32)
            v = jnp.dot(y, w_attn_ref[l, h, 2], preferred_element_type=jnp.float32)
            q = q.reshape(B, S, HEAD_DIM)             # sublane-only split: free
            k = k.reshape(B, S, HEAD_DIM)
            v = v.reshape(B, S, HEAD_DIM)

            s = jnp.einsum('bqd,bkd->bqk', q, k,
                           preferred_element_type=jnp.float32) * scale + attn_bias
            s = s - jnp.max(s, axis=-1, keepdims=True)
            p = jnp.exp(s)
            p = p / jnp.sum(p, axis=-1, keepdims=True)            # exact softmax
            o = jnp.einsum('bqk,bkd->bqd', p, v,
                           preferred_element_type=jnp.float32).reshape(B * S, HEAD_DIM)

            # Project through this head's slice of W_o (stored transposed as
            # (D, Hd)) and accumulate directly into the (B*S, D) output —
            # no lane-axis slicing/concatenation anywhere.
            attn_out = attn_out + jnp.einsum('nh,dh->nd', o, w_attn_ref[l, h, 3],
                                             preferred_element_type=jnp.float32)
        x = x + attn_out

        # ---------------- feed-forward sub-layer (pre-norm) ------------------
        y = _layer_norm(x, ln2_g, ln2_b)
        h1 = jnp.maximum(
            jnp.dot(y, w_ffn_ref[l, 0], preferred_element_type=jnp.float32) + b1, 0.0)
        # w_ffn[l, 1] holds W2^T (D, F): contract over F (A @ B^T pattern).
        x = x + jnp.einsum('nf,df->nd', h1, w_ffn_ref[l, 1],
                           preferred_element_type=jnp.float32) + b2

    # ------- final layer-norm + projection + smoothed CE + masked mean -------
    lnf_g = aux_ref[ROW_FINAL_LN + 0:ROW_FINAL_LN + 1, 0:MODEL_DIM]
    lnf_b = aux_ref[ROW_FINAL_LN + 1:ROW_FINAL_LN + 2, 0:MODEL_DIM]
    proj_b = aux_ref[ROW_FINAL_LN + 2:ROW_FINAL_LN + 3, 0:LABEL_SIZE]
    wp_t = aux_ref[ROW_WPT:ROW_WPT + LABEL_SIZE, 0:MODEL_DIM]          # (L, D)
    labels = aux_ref[ROW_LABELS:ROW_LABELS + B * S, 0:1]               # (BS, 1)
    tok_mask = aux_ref[ROW_TOKMASK:ROW_TOKMASK + B * S, 0:1]           # (BS, 1)

    y = _layer_norm(x, lnf_g, lnf_b)
    logits = jnp.einsum('nd,ld->nl', y, wp_t,
                        preferred_element_type=jnp.float32) + proj_b   # (BS, L)
    lmax = jnp.max(logits, axis=-1, keepdims=True)
    lse = jnp.log(jnp.sum(jnp.exp(logits - lmax), axis=-1, keepdims=True)) + lmax
    logp = logits - lse

    classes = jax.lax.broadcasted_iota(jnp.int32, logp.shape, 1)       # (BS, L)
    onehot = (classes == labels.astype(jnp.int32)).astype(jnp.float32)
    tgt_logp = jnp.sum(onehot * logp, axis=-1, keepdims=True)          # (BS, 1)
    sum_logp = jnp.sum(logp, axis=-1, keepdims=True)                   # (BS, 1)
    loss_tok = -((_CONF - _LOW) * tgt_logp + _LOW * sum_logp) - _NORMALIZING

    loss_sum = jnp.sum(loss_tok * tok_mask)
    mask_sum = jnp.maximum(jnp.sum(tok_mask), 1.0)   # guard: all-padding batch
    loss_ref[0, 0] = loss_sum / mask_sum


# ------------------------------- wrapper --------------------------------------
def sinusoid_position_encoding(seq_len, dim):
    # THUMT-style timing signal: concat(sin, cos) over channels.
    num_ts = dim // 2
    pos = jnp.arange(seq_len, dtype=jnp.float32)[:, None]
    inv = jnp.exp(jnp.arange(num_ts, dtype=jnp.float32)
                  * -(math.log(10000.0) / max(num_ts - 1, 1)))[None, :]
    scaled = pos * inv
    return jnp.concatenate([jnp.sin(scaled), jnp.cos(scaled)], axis=-1)


@jax.jit
def deepattn_forward(params, words, preds, labels):
    """Matches DeepAttn.forward: masked mean of smoothed CE over non-pad tokens."""
    Bn, Sn = words.shape
    Dn = MODEL_DIM

    # ---- glue: embeddings + positional encoding + masks ----
    word_embed = params["word_embed"][words]                   # (B, S, feature_dim)
    pred_embed = params["pred_embed"][preds]                   # (B, S, feature_dim)
    x = jnp.concatenate([word_embed, pred_embed], axis=-1)     # (B, S, model_dim)
    x = x * (Dn ** 0.5) + params["bias"]
    x = x + sinusoid_position_encoding(Sn, Dn)[None]
    # TODO(synk): residual_dropout is undefined in the source; eval-mode identity.

    valid = (words != WORD_PAD_ID).astype(jnp.float32)         # (B, S)

    # Pack dynamic rows into the lane-dense aux slab (no extra operands/DMAs).
    aux = params["aux"]
    aux = aux.at[ROW_KEYMASK:ROW_KEYMASK + Bn, :Sn].set(valid)
    aux = aux.at[ROW_LABELS:ROW_LABELS + Bn * Sn, 0].set(
        labels.reshape(-1).astype(jnp.float32))
    aux = aux.at[ROW_TOKMASK:ROW_TOKMASK + Bn * Sn, 0].set(valid.reshape(-1))

    x2 = x.reshape(Bn * Sn, Dn).astype(jnp.float32)            # (B*S, D)

    vmem = lambda: pl.BlockSpec(memory_space=pltpu.MemorySpace.VMEM)
    loss = pl.pallas_call(
        deepattn_fused_kernel,
        out_shape=jax.ShapeDtypeStruct((1, 1), jnp.float32),
        in_specs=[vmem(), vmem(), vmem(), vmem()],
        out_specs=pl.BlockSpec(memory_space=pltpu.MemorySpace.SMEM),
    )(x2, params["w_attn"], params["w_ffn"], aux)
    return loss[0, 0]


# ------------------------------- parameters ------------------------------------
def init_params(key):
    ks = jax.random.split(key, 4 + LAYER_NUM)
    std = MODEL_DIM ** -0.5

    word_embed = jax.random.normal(ks[0], (VOCAB_SIZE, FEATURE_DIM),
                                   jnp.float32) * FEATURE_DIM ** -0.5
    pred_embed = jax.random.normal(ks[1], (2, FEATURE_DIM),
                                   jnp.float32) * FEATURE_DIM ** -0.5
    project_w = jax.random.normal(ks[2], (MODEL_DIM, LABEL_SIZE), jnp.float32) * std

    aux = jnp.zeros((AUX_ROWS, AUX_COLS), jnp.float32)
    w_attn_layers, w_ffn_layers = [], []
    for l in range(LAYER_NUM):
        lk = jax.random.split(ks[4 + l], 6)
        wq = jax.random.normal(lk[0], (MODEL_DIM, MODEL_DIM), jnp.float32) * std
        wk = jax.random.normal(lk[1], (MODEL_DIM, MODEL_DIM), jnp.float32) * std
        wv = jax.random.normal(lk[2], (MODEL_DIM, MODEL_DIM), jnp.float32) * std
        wo = jax.random.normal(lk[3], (MODEL_DIM, MODEL_DIM), jnp.float32) * std
        w1 = jax.random.normal(lk[4], (MODEL_DIM, FILTER_DIM), jnp.float32) * std
        w2 = jax.random.normal(lk[5], (FILTER_DIM, MODEL_DIM),
                               jnp.float32) * FILTER_DIM ** -0.5

        # Pre-split attention weights per head: (H, 4, D, Hd) with
        # [Wq_h, Wk_h, Wv_h, (Wo rows for head h)^T] — removes in-kernel slicing.
        heads = []
        for h in range(NUM_HEADS):
            sl = slice(h * HEAD_DIM, (h + 1) * HEAD_DIM)
            heads.append(jnp.stack([wq[:, sl], wk[:, sl], wv[:, sl],
                                    wo[sl, :].T], axis=0))
        w_attn_layers.append(jnp.stack(heads, axis=0))          # (H, 4, D, Hd)
        w_ffn_layers.append(jnp.stack([w1, w2.T], axis=0))      # (2, D, F)

        r = l * ROWS_PER_LAYER
        aux = aux.at[r + 0, :MODEL_DIM].set(1.0)                # ln1 gain
        aux = aux.at[r + 2, :MODEL_DIM].set(1.0)                # ln2 gain
        # ln1/ln2 bias, b1, b2 stay zero

    aux = aux.at[ROW_FINAL_LN, :MODEL_DIM].set(1.0)             # final LN gain
    # final LN bias and projection bias stay zero
    aux = aux.at[ROW_WPT:ROW_WPT + LABEL_SIZE, :MODEL_DIM].set(project_w.T)

    return {
        "word_embed": word_embed,
        "pred_embed": pred_embed,
        "bias": jnp.zeros((MODEL_DIM,), jnp.float32),
        "w_attn": jnp.stack(w_attn_layers),                     # (L, H, 4, D, Hd)
        "w_ffn": jnp.stack(w_ffn_layers),                       # (L, 2, D, F)
        "aux": aux,                                             # (72, 128)
    }


# --------------------------------- main -----------------------------------------
if __name__ == "__main__":
    key = jax.random.PRNGKey(0)
    k_params, k_words, k_preds, k_labels = jax.random.split(key, 4)

    params = init_params(k_params)

    words = jax.random.randint(k_words, (B, S), 1, VOCAB_SIZE, dtype=jnp.int32)
    words = words.at[1, 6:].set(WORD_PAD_ID)                 # some padding
    preds = (jax.random.uniform(k_preds, (B, S)) > 0.8).astype(jnp.int32)
    labels = jax.random.randint(k_labels, (B, S), 0, LABEL_SIZE, dtype=jnp.int32)

    loss = deepattn_forward(params, words, preds, labels)
    loss = jax.block_until_ready(loss)
    assert jnp.isfinite(loss)
    print("KERNEL_OK")
</pallas_src>

<mosaic_0001>
module attributes {stable_mosaic.version = 11 : i64} {
  func.func @deepattn_fused_kernel(%arg0: memref<16x32xf32, #tpu.memory_space<vmem>>, %arg1: memref<2x2x4x32x16xf32, #tpu.memory_space<vmem>>, %arg2: memref<2x2x32x64xf32, #tpu.memory_space<vmem>>, %arg3: memref<72x128xf32, #tpu.memory_space<vmem>>, %arg4: memref<1x1xf32, #tpu.memory_space<smem>>) attributes {dimension_semantics = [], scalar_prefetch = 0 : i64, scratch_operands = 0 : i64, tpu.core_type = #tpu.core_type<tc>} {
    %c0 = arith.constant 0 : index
    %c0_0 = arith.constant 0 : index
    %0 = vector.load %arg0[%c0, %c0_0] : memref<16x32xf32, #tpu.memory_space<vmem>>, vector<16x32xf32>
    %c16 = arith.constant 16 : index
    %c0_1 = arith.constant 0 : index
    %1 = vector.load %arg3[%c16, %c0_1] : memref<72x128xf32, #tpu.memory_space<vmem>>, vector<2x8xf32>
    %cst = arith.constant 1.000000e+00 : f32
    %2 = vector.broadcast %cst : f32 to vector<2x8xf32>
    %3 = arith.subf %1, %2 : vector<2x8xf32>
    %cst_2 = arith.constant 1.000000e+09 : f32
    %4 = vector.broadcast %cst_2 : f32 to vector<2x8xf32>
    %5 = arith.mulf %3, %4 : vector<2x8xf32>
    %6 = vector.shape_cast %5 : vector<2x8xf32> to vector<2x1x8xf32>
    %c0_3 = arith.constant 0 : index
    %c0_4 = arith.constant 0 : index
    %7 = vector.load %arg3[%c0_3, %c0_4] : memref<72x128xf32, #tpu.memory_space<vmem>>, vector<1x32xf32>
    %c1 = arith.constant 1 : index
    %c0_5 = arith.constant 0 : index
    %8 = vector.load %arg3[%c1, %c0_5] : memref<72x128xf32, #tpu.memory_space<vmem>>, vector<1x32xf32>
    %c2 = arith.constant 2 : index
    %c0_6 = arith.constant 0 : index
    %9 = vector.load %arg3[%c2, %c0_6] : memref<72x128xf32, #tpu.memory_space<vmem>>, vector<1x32xf32>
    %c3 = arith.constant 3 : index
    %c0_7 = arith.constant 0 : index
    %10 = vector.load %arg3[%c3, %c0_7] : memref<72x128xf32, #tpu.memory_space<vmem>>, vector<1x32xf32>
    %c4 = arith.constant 4 : index
    %c0_8 = arith.constant 0 : index
    %11 = vector.load %arg3[%c4, %c0_8] : memref<72x128xf32, #tpu.memory_space<vmem>>, vector<1x64xf32>
    %c5 = arith.constant 5 : index
    %c0_9 = arith.constant 0 : index
    %12 = vector.load %arg3[%c5, %c0_9] : memref<72x128xf32, #tpu.memory_space<vmem>>, vector<1x32xf32>
    %cst_10 = arith.constant dense<0.000000e+00> : vector<16xf32>
    %13 = vector.multi_reduction <add>, %0, %cst_10 [1] : vector<16x32xf32> to vector<16xf32>
    %14 = vector.shape_cast %13 : vector<16xf32> to vector<16x1xf32>
    %cst_11 = arith.constant 3.200000e+01 : f32
    %15 = vector.broadcast %cst_11 : f32 to vector<16x1xf32>
    %16 = arith.divf %14, %15 : vector<16x1xf32>
    %17 = vector.broadcast %16 : vector<16x1xf32> to vector<16x32xf32>
    %18 = arith.subf %0, %17 : vector<16x32xf32>
    %19 = arith.mulf %18, %18 : vector<16x32xf32>
    %cst_12 = arith.constant dense<0.000000e+00> : vector<16xf32>
    %20 = vector.multi_reduction <add>, %19, %cst_12 [1] : vector<16x32xf32> to vector<16xf32>
    %21 = vector.shape_cast %20 : vector<16xf32> to vector<16x1xf32>
    %cst_13 = arith.constant 3.200000e+01 : f32
    %22 = vector.broadcast %cst_13 : f32 to vector<16x1xf32>
    %23 = arith.divf %21, %22 : vector<16x1xf32>
    %24 = vector.broadcast %16 : vector<16x1xf32> to vector<16x32xf32>
    %25 = arith.subf %0, %24 : vector<16x32xf32>
    %cst_14 = arith.constant 9.99999997E-7 : f32
    %26 = vector.broadcast %cst_14 : f32 to vector<16x1xf32>
    %27 = arith.addf %23, %26 : vector<16x1xf32>
    %28 = math.rsqrt %27 : vector<16x1xf32>
    %29 = vector.broadcast %28 : vector<16x1xf32> to vector<16x32xf32>
    %30 = arith.mulf %25, %29 : vector<16x32xf32>
    %31 = vector.broadcast %7 : vector<1x32xf32> to vector<16x32xf32>
    %32 = arith.mulf %30, %31 : vector<16x32xf32>
    %33 = vector.broadcast %8 : vector<1x32xf32> to vector<16x32xf32>
    %34 = arith.addf %32, %33 : vector<16x32xf32>
    %cst_15 = arith.constant 0.000000e+00 : f32
    %35 = vector.broadcast %cst_15 : f32 to vector<16x32xf32>
    %c0_16 = arith.constant 0 : index
    %c0_17 = arith.constant 0 : index
    %c0_18 = arith.constant 0 : index
    %c0_19 = arith.constant 0 : index
    %c0_20 = arith.constant 0 : index
    %36 = vector.load %arg1[%c0_16, %c0_17, %c0_18, %c0_19, %c0_20] : memref<2x2x4x32x16xf32, #tpu.memory_space<vmem>>, vector<1x1x1x32x16xf32>
    %37 = vector.shape_cast %36 : vector<1x1x1x32x16xf32> to vector<32x16xf32>
    %cst_21 = arith.constant dense<0.000000e+00> : vector<16x16xf32>
    %38 = tpu.matmul %34, %37, %cst_21 {dimension_numbers = #tpu.dot_dimension_numbers<[1], [0], [0], [1], [0, 0, 1, 1], [], []>} : vector<16x32xf32>, vector<32x16xf32>, vector<16x16xf32> -> vector<16x16xf32>
    %c0_22 = arith.constant 0 : index
    %c0_23 = arith.constant 0 : index
    %c1_24 = arith.constant 1 : index
    %c0_25 = arith.constant 0 : index
    %c0_26 = arith.constant 0 : index
    %39 = vector.load %arg1[%c0_22, %c0_23, %c1_24, %c0_25, %c0_26] : memref<2x2x4x32x16xf32, #tpu.memory_space<vmem>>, vector<1x1x1x32x16xf32>
    %40 = vector.shape_cast %39 : vector<1x1x1x32x16xf32> to vector<32x16xf32>
    %cst_27 = arith.constant dense<0.000000e+00> : vector<16x16xf32>
    %41 = tpu.matmul %34, %40, %cst_27 {dimension_numbers = #tpu.dot_dimension_numbers<[1], [0], [0], [1], [0, 0, 1, 1], [], []>} : vector<16x32xf32>, vector<32x16xf32>, vector<16x16xf32> -> vector<16x16xf32>
    %c0_28 = arith.constant 0 : index
    %c0_29 = arith.constant 0 : index
    %c2_30 = arith.constant 2 : index
    %c0_31 = arith.constant 0 : index
    %c0_32 = arith.constant 0 : index
    %42 = vector.load %arg1[%c0_28, %c0_29, %c2_30, %c0_31, %c0_32] : memref<2x2x4x32x16xf32, #tpu.memory_space<vmem>>, vector<1x1x1x32x16xf32>
    %43 = vector.shape_cast %42 : vector<1x1x1x32x16xf32> to vector<32x16xf32>
    %cst_33 = arith.constant dense<0.000000e+00> : vector<16x16xf32>
    %44 = tpu.matmul %34, %43, %cst_33 {dimension_numbers = #tpu.dot_dimension_numbers<[1], [0], [0], [1], [0, 0, 1, 1], [], []>} : vector<16x32xf32>, vector<32x16xf32>, vector<16x16xf32> -> vector<16x16xf32>
    %45 = vector.shape_cast %38 : vector<16x16xf32> to vector<2x8x16xf32>
    %46 = vector.shape_cast %41 : vector<16x16xf32> to vector<2x8x16xf32>
    %47 = vector.shape_cast %44 : vector<16x16xf32> to vector<2x8x16xf32>
    "tpu.trace_start"() <{level = 10 : i32, message = "bqd,bkd->bqk"}> : () -> ()
    %cst_34 = arith.constant dense<0.000000e+00> : vector<2x8x8xf32>
    %48 = tpu.matmul %45, %46, %cst_34 {dimension_numbers = #tpu.dot_dimension_numbers<[2], [2], [1], [1], [0, 0, 0, 1, 1, 1], [0], [0]>} : vector<2x8x16xf32>, vector<2x8x16xf32>, vector<2x8x8xf32> -> vector<2x8x8xf32>
    "tpu.trace_stop"() : () -> ()
    %cst_35 = arith.constant 2.500000e-01 : f32
    %49 = vector.broadcast %cst_35 : f32 to vector<2x8x8xf32>
    %50 = arith.mulf %48, %49 : vector<2x8x8xf32>
    %51 = vector.broadcast %6 : vector<2x1x8xf32> to vector<2x8x8xf32>
    %52 = arith.addf %50, %51 : vector<2x8x8xf32>
    %cst_36 = arith.constant dense<0xFF800000> : vector<2x8xf32>
    %53 = vector.multi_reduction <maximumf>, %52, %cst_36 [2] : vector<2x8x8xf32> to vector<2x8xf32>
    %54 = vector.shape_cast %53 : vector<2x8xf32> to vector<2x8x1xf32>
    %55 = vector.broadcast %54 : vector<2x8x1xf32> to vector<2x8x8xf32>
    %56 = arith.subf %52, %55 : vector<2x8x8xf32>
    %57 = math.exp %56 : vector<2x8x8xf32>
    %cst_37 = arith.constant dense<0.000000e+00> : vector<2x8xf32>
    %58 = vector.multi_reduction <add>, %57, %cst_37 [2] : vector<2x8x8xf32> to vector<2x8xf32>
    %59 = vector.shape_cast %58 : vector<2x8xf32> to vector<2x8x1xf32>
    %60 = vector.broadcast %59 : vector<2x8x1xf32> to vector<2x8x8xf32>
    %61 = arith.divf %57, %60 : vector<2x8x8xf32>
    "tpu.trace_start"() <{level = 10 : i32, message = "bqk,bkd->bqd"}> : () -> ()
    %cst_38 = arith.constant dense<0.000000e+00> : vector<2x8x16xf32>
    %62 = tpu.matmul %61, %47, %cst_38 {dimension_numbers = #tpu.dot_dimension_numbers<[2], [1], [1], [2], [0, 0, 0, 1, 1, 2], [0], [0]>} : vector<2x8x8xf32>, vector<2x8x16xf32>, vector<2x8x16xf32> -> vector<2x8x16xf32>
    "tpu.trace_stop"() : () -> ()
    %63 = vector.shape_cast %62 : vector<2x8x16xf32> to vector<16x16xf32>
    %c0_39 = arith.constant 0 : index
    %c0_40 = arith.constant 0 : index
    %c3_41 = arith.constant 3 : index
    %c0_42 = arith.constant 0 : index
    %c0_43 = arith.constant 0 : index
    %64 = vector.load %arg1[%c0_39, %c0_40, %c3_41, %c0_42, %c0_43] : memref<2x2x4x32x16xf32, #tpu.memory_space<vmem>>, vector<1x1x1x32x16xf32>
    %65 = vector.shape_cast %64 : vector<1x1x1x32x16xf32> to vector<32x16xf32>
    "tpu.trace_start"() <{level = 10 : i32, message = "nh,dh->nd"}> : () -> ()
    %cst_44 = arith.constant dense<0.000000e+00> : vector<16x32xf32>
    %66 = tpu.matmul %63, %65, %cst_44 {dimension_numbers = #tpu.dot_dimension_numbers<[1], [1], [0], [0], [0, 0, 1, 0], [], []>} : vector<16x16xf32>, vector<32x16xf32>, vector<16x32xf32> -> vector<16x32xf32>
    "tpu.trace_stop"() : () -> ()
    %67 = arith.addf %35, %66 : vector<16x32xf32>
    %c0_45 = arith.constant 0 : index
    %c1_46 = arith.constant 1 : index
    %c0_47 = arith.constant 0 : index
    %c0_48 = arith.constant 0 : index
    %c0_49 = arith.constant 0 : index
    %68 = vector.load %arg1[%c0_45, %c1_46, %c0_47, %c0_48, %c0_49] : memref<2x2x4x32x16xf32, #tpu.memory_space<vmem>>, vector<1x1x1x32x16xf32>
    %69 = vector.shape_cast %68 : vector<1x1x1x32x16xf32> to vector<32x16xf32>
    %cst_50 = arith.constant dense<0.000000e+00> : vector<16x16xf32>
    %70 = tpu.matmul %34, %69, %cst_50 {dimension_numbers = #tpu.dot_dimension_numbers<[1], [0], [0], [1], [0, 0, 1, 1], [], []>} : vector<16x32xf32>, vector<32x16xf32>, vector<16x16xf32> -> vector<16x16xf32>
    %c0_51 = arith.constant 0 : index
    %c1_52 = arith.constant 1 : index
    %c1_53 = arith.constant 1 : index
    %c0_54 = arith.constant 0 : index
    %c0_55 = arith.constant 0 : index
    %71 = vector.load %arg1[%c0_51, %c1_52, %c1_53, %c0_54, %c0_55] : memref<2x2x4x32x16xf32, #tpu.memory_space<vmem>>, vector<1x1x1x32x16xf32>
    %72 = vector.shape_cast %71 : vector<1x1x1x32x16xf32> to vector<32x16xf32>
    %cst_56 = arith.constant dense<0.000000e+00> : vector<16x16xf32>
    %73 = tpu.matmul %34, %72, %cst_56 {dimension_numbers = #tpu.dot_dimension_numbers<[1], [0], [0], [1], [0, 0, 1, 1], [], []>} : vector<16x32xf32>, vector<32x16xf32>, vector<16x16xf32> -> vector<16x16xf32>
    %c0_57 = arith.constant 0 : index
    %c1_58 = arith.constant 1 : index
    %c2_59 = arith.constant 2 : index
    %c0_60 = arith.constant 0 : index
    %c0_61 = arith.constant 0 : index
    %74 = vector.load %arg1[%c0_57, %c1_58, %c2_59, %c0_60, %c0_61] : memref<2x2x4x32x16xf32, #tpu.memory_space<vmem>>, vector<1x1x1x32x16xf32>
    %75 = vector.shape_cast %74 : vector<1x1x1x32x16xf32> to vector<32x16xf32>
    %cst_62 = arith.constant dense<0.000000e+00> : vector<16x16xf32>
    %76 = tpu.matmul %34, %75, %cst_62 {dimension_numbers = #tpu.dot_dimension_numbers<[1], [0], [0], [1], [0, 0, 1, 1], [], []>} : vector<16x32xf32>, vector<32x16xf32>, vector<16x16xf32> -> vector<16x16xf32>
    %77 = vector.shape_cast %70 : vector<16x16xf32> to vector<2x8x16xf32>
    %78 = vector.shape_cast %73 : vector<16x16xf32> to vector<2x8x16xf32>
    %79 = vector.shape_cast %76 : vector<16x16xf32> to vector<2x8x16xf32>
    "tpu.trace_start"() <{level = 10 : i32, message = "bqd,bkd->bqk"}> : () -> ()
    %cst_63 = arith.constant dense<0.000000e+00> : vector<2x8x8xf32>
    %80 = tpu.matmul %77, %78, %cst_63 {dimension_numbers = #tpu.dot_dimension_numbers<[2], [2], [1], [1], [0, 0, 0, 1, 1, 1], [0], [0]>} : vector<2x8x16xf32>, vector<2x8x16xf32>, vector<2x8x8xf32> -> vector<2x8x8xf32>
    "tpu.trace_stop"() : () -> ()
    %cst_64 = arith.constant 2.500000e-01 : f32
    %81 = vector.broadcast %cst_64 : f32 to vector<2x8x8xf32>
    %82 = arith.mulf %80, %81 : vector<2x8x8xf32>
    %83 = vector.broadcast %6 : vector<2x1x8xf32> to vector<2x8x8xf32>
    %84 = arith.addf %82, %83 : vector<2x8x8xf32>
    %cst_65 = arith.constant dense<0xFF800000> : vector<2x8xf32>
    %85 = vector.multi_reduction <maximumf>, %84, %cst_65 [2] : vector<2x8x8xf32> to vector<2x8xf32>
    %86 = vector.shape_cast %85 : vector<2x8xf32> to vector<2x8x1xf32>
    %87 = vector.broadcast %86 : vector<2x8x1xf32> to vector<2x8x8xf32>
    %88 = arith.subf %84, %87 : vector<2x8x8xf32>
    %89 = math.exp %88 : vector<2x8x8xf32>
    %cst_66 = arith.constant dense<0.000000e+00> : vector<2x8xf32>
    %90 = vector.multi_reduction <add>, %89, %cst_66 [2] : vector<2x8x8xf32> to vector<2x8xf32>
    %91 = vector.shape_cast %90 : vector<2x8xf32> to vector<2x8x1xf32>
    %92 = vector.broadcast %91 : vector<2x8x1xf32> to vector<2x8x8xf32>
    %93 = arith.divf %89, %92 : vector<2x8x8xf32>
    "tpu.trace_start"() <{level = 10 : i32, message = "bqk,bkd->bqd"}> : () -> ()
    %cst_67 = arith.constant dense<0.000000e+00> : vector<2x8x16xf32>
    %94 = tpu.matmul %93, %79, %cst_67 {dimension_numbers = #tpu.dot_dimension_numbers<[2], [1], [1], [2], [0, 0, 0, 1, 1, 2], [0], [0]>} : vector<2x8x8xf32>, vector<2x8x16xf32>, vector<2x8x16xf32> -> vector<2x8x16xf32>
    "tpu.trace_stop"() : () -> ()
    %95 = vector.shape_cast %94 : vector<2x8x16xf32> to vector<16x16xf32>
    %c0_68 = arith.constant 0 : index
    %c1_69 = arith.constant 1 : index
    %c3_70 = arith.constant 3 : index
    %c0_71 = arith.constant 0 : index
    %c0_72 = arith.constant 0 : index
    %96 = vector.load %arg1[%c0_68, %c1_69, %c3_70, %c0_71, %c0_72] : memref<2x2x4x32x16xf32, #tpu.memory_space<vmem>>, vector<1x1x1x32x16xf32>
    %97 = vector.shape_cast %96 : vector<1x1x1x32x16xf32> to vector<32x16xf32>
    "tpu.trace_start"() <{level = 10 : i32, message = "nh,dh->nd"}> : () -> ()
    %cst_73 = arith.constant dense<0.000000e+00> : vector<16x32xf32>
    %98 = tpu.matmul %95, %97, %cst_73 {dimension_numbers = #tpu.dot_dimension_numbers<[1], [1], [0], [0], [0, 0, 1, 0], [], []>} : vector<16x16xf32>, vector<32x16xf32>, vector<16x32xf32> -> vector<16x32xf32>
    "tpu.trace_stop"() : () -> ()
    %99 = arith.addf %67, %98 : vector<16x32xf32>
    %100 = arith.addf %0, %99 : vector<16x32xf32>
    %cst_74 = arith.constant dense<0.000000e+00> : vector<16xf32>
    %101 = vector.multi_reduction <add>, %100, %cst_74 [1] : vector<16x32xf32> to vector<16xf32>
    %102 = vector.shape_cast %101 : vector<16xf32> to vector<16x1xf32>
    %cst_75 = arith.constant 3.200000e+01 : f32
    %103 = vector.broadcast %cst_75 : f32 to vector<16x1xf32>
    %104 = arith.divf %102, %103 : vector<16x1xf32>
    %105 = vector.broadcast %104 : vector<16x1xf32> to vector<16x32xf32>
    %106 = arith.subf %100, %105 : vector<16x32xf32>
    %107 = arith.mulf %106, %106 : vector<16x32xf32>
    %cst_76 = arith.constant dense<0.000000e+00> : vector<16xf32>
    %108 = vector.multi_reduction <add>, %107, %cst_76 [1] : vector<16x32xf32> to vector<16xf32>
    %109 = vector.shape_cast %108 : vector<16xf32> to vector<16x1xf32>
    %cst_77 = arith.constant 3.200000e+01 : f32
    %110 = vector.broadcast %cst_77 : f32 to vector<16x1xf32>
    %111 = arith.divf %109, %110 : vector<16x1xf32>
    %112 = vector.broadcast %104 : vector<16x1xf32> to vector<16x32xf32>
    %113 = arith.subf %100, %112 : vector<16x32xf32>
    %cst_78 = arith.constant 9.99999997E-7 : f32
    %114 = vector.broadcast %cst_78 : f32 to vector<16x1xf32>
    %115 = arith.addf %111, %114 : vector<16x1xf32>
    %116 = math.rsqrt %115 : vector<16x1xf32>
    %117 = vector.broadcast %116 : vector<16x1xf32> to vector<16x32xf32>
    %118 = arith.mulf %113, %117 : vector<16x32xf32>
    %119 = vector.broadcast %9 : vector<1x32xf32> to vector<16x32xf32>
    %120 = arith.mulf %118, %119 : vector<16x32xf32>
    %121 = vector.broadcast %10 : vector<1x32xf32> to vector<16x32xf32>
    %122 = arith.addf %120, %121 : vector<16x32xf32>
    %c0_79 = arith.constant 0 : index
    %c0_80 = arith.constant 0 : index
    %c0_81 = arith.constant 0 : index
    %c0_82 = arith.constant 0 : index
    %123 = vector.load %arg2[%c0_79, %c0_80, %c0_81, %c0_82] : memref<2x2x32x64xf32, #tpu.memory_space<vmem>>, vector<1x1x32x64xf32>
    %124 = vector.shape_cast %123 : vector<1x1x32x64xf32> to vector<32x64xf32>
    %cst_83 = arith.constant dense<0.000000e+00> : vector<16x64xf32>
    %125 = tpu.matmul %122, %124, %cst_83 {dimension_numbers = #tpu.dot_dimension_numbers<[1], [0], [0], [1], [0, 0, 1, 1], [], []>} : vector<16x32xf32>, vector<32x64xf32>, vector<16x64xf32> -> vector<16x64xf32>
    %126 = vector.broadcast %11 : vector<1x64xf32> to vector<16x64xf32>
    %127 = arith.addf %125, %126 : vector<16x64xf32>
    %cst_84 = arith.constant 0.000000e+00 : f32
    %128 = vector.broadcast %cst_84 : f32 to vector<16x64xf32>
    %129 = arith.maximumf %127, %128 : vector<16x64xf32>
    %c0_85 = arith.constant 0 : index
    %c1_86 = arith.constant 1 : index
    %c0_87 = arith.constant 0 : index
    %c0_88 = arith.constant 0 : index
    %130 = vector.load %arg2[%c0_85, %c1_86, %c0_87, %c0_88] : memref<2x2x32x64xf32, #tpu.memory_space<vmem>>, vector<1x1x32x64xf32>
    %131 = vector.shape_cast %130 : vector<1x1x32x64xf32> to vector<32x64xf32>
    "tpu.trace_start"() <{level = 10 : i32, message = "nf,df->nd"}> : () -> ()
    %cst_89 = arith.constant dense<0.000000e+00> : vector<16x32xf32>
    %132 = tpu.matmul %129, %131, %cst_89 {dimension_numbers = #tpu.dot_dimension_numbers<[1], [1], [0], [0], [0, 0, 1, 0], [], []>} : vector<16x64xf32>, vector<32x64xf32>, vector<16x32xf32> -> vector<16x32xf32>
    "tpu.trace_stop"() : () -> ()
    %133 = arith.addf %100, %132 : vector<16x32xf32>
    %134 = vector.broadcast %12 : vector<1x32xf32> to vector<16x32xf32>
    %135 = arith.addf %133, %134 : vector<16x32xf32>
    %c6 = arith.constant 6 : index
    %c0_90 = arith.constant 0 : index
    %136 = vector.load %arg3[%c6, %c0_90] : memref<72x128xf32, #tpu.memory_space<vmem>>, vector<1x32xf32>
    %c7 = arith.constant 7 : index
    %c0_91 = arith.constant 0 : index
    %137 = vector.load %arg3[%c7, %c0_91] : memref<72x128xf32, #tpu.memory_space<vmem>>, vector<1x32xf32>
    %c8 = arith.constant 8 : index
    %c0_92 = arith.constant 0 : index
    %138 = vector.load %arg3[%c8, %c0_92] : memref<72x128xf32, #tpu.memory_space<vmem>>, vector<1x32xf32>
    %c9 = arith.constant 9 : index
    %c0_93 = arith.constant 0 : index
    %139 = vector.load %arg3[%c9, %c0_93] : memref<72x128xf32, #tpu.memory_space<vmem>>, vector<1x32xf32>
    %c10 = arith.constant 10 : index
    %c0_94 = arith.constant 0 : index
    %140 = vector.load %arg3[%c10, %c0_94] : memref<72x128xf32, #tpu.memory_space<vmem>>, vector<1x64xf32>
    %c11 = arith.constant 11 : index
    %c0_95 = arith.constant 0 : index
    %141 = vector.load %arg3[%c11, %c0_95] : memref<72x128xf32, #tpu.memory_space<vmem>>, vector<1x32xf32>
    %cst_96 = arith.constant dense<0.000000e+00> : vector<16xf32>
    %142 = vector.multi_reduction <add>, %135, %cst_96 [1] : vector<16x32xf32> to vector<16xf32>
    %143 = vector.shape_cast %142 : vector<16xf32> to vector<16x1xf32>
    %cst_97 = arith.constant 3.200000e+01 : f32
    %144 = vector.broadcast %cst_97 : f32 to vector<16x1xf32>
    %145 = arith.divf %143, %144 : vector<16x1xf32>
    %146 = vector.broadcast %145 : vector<16x1xf32> to vector<16x32xf32>
    %147 = arith.subf %135, %146 : vector<16x32xf32>
    %148 = arith.mulf %147, %147 : vector<16x32xf32>
    %cst_98 = arith.constant dense<0.000000e+00> : vector<16xf32>
    %149 = vector.multi_reduction <add>, %148, %cst_98 [1] : vector<16x32xf32> to vector<16xf32>
    %150 = vector.shape_cast %149 : vector<16xf32> to vector<16x1xf32>
    %cst_99 = arith.constant 3.200000e+01 : f32
    %151 = vector.broadcast %cst_99 : f32 to vector<16x1xf32>
    %152 = arith.divf %150, %151 : vector<16x1xf32>
    %153 = vector.broadcast %145 : vector<16x1xf32> to vector<16x32xf32>
    %154 = arith.subf %135, %153 : vector<16x32xf32>
    %cst_100 = arith.constant 9.99999997E-7 : f32
    %155 = vector.broadcast %cst_100 : f32 to vector<16x1xf32>
    %156 = arith.addf %152, %155 : vector<16x1xf32>
    %157 = math.rsqrt %156 : vector<16x1xf32>
    %158 = vector.broadcast %157 : vector<16x1xf32> to vector<16x32xf32>
    %159 = arith.mulf %154, %158 : vector<16x32xf32>
    %160 = vector.broadcast %136 : vector<1x32xf32> to vector<16x32xf32>
    %161 = arith.mulf %159, %160 : vector<16x32xf32>
    %162 = vector.broadcast %137 : vector<1x32xf32> to vector<16x32xf32>
    %163 = arith.addf %161, %162 : vector<16x32xf32>
    %cst_101 = arith.constant 0.000000e+00 : f32
    %164 = vector.broadcast %cst_101 : f32 to vector<16x32xf32>
    %c1_102 = arith.constant 1 : index
    %c0_103 = arith.constant 0 : index
    %c0_104 = arith.constant 0 : index
    %c0_105 = arith.constant 0 : index
    %c0_106 = arith.constant 0 : index
    %165 = vector.load %arg1[%c1_102, %c0_103, %c0_104, %c0_105, %c0_106] : memref<2x2x4x32x16xf32, #tpu.memory_space<vmem>>, vector<1x1x1x32x16xf32>
    %166 = vector.shape_cast %165 : vector<1x1x1x32x16xf32> to vector<32x16xf32>
    %cst_107 = arith.constant dense<0.000000e+00> : vector<16x16xf32>
    %167 = tpu.matmul %163, %166, %cst_107 {dimension_numbers = #tpu.dot_dimension_numbers<[1], [0], [0], [1], [0, 0, 1, 1], [], []>} : vector<16x32xf32>, vector<32x16xf32>, vector<16x16xf32> -> vector<16x16xf32>
    %c1_108 = arith.constant 1 : index
    %c0_109 = arith.constant 0 : index
    %c1_110 = arith.constant 1 : index
    %c0_111 = arith.constant 0 : index
    %c0_112 = arith.constant 0 : index
    %168 = vector.load %arg1[%c1_108, %c0_109, %c1_110, %c0_111, %c0_112] : memref<2x2x4x32x16xf32, #tpu.memory_space<vmem>>, vector<1x1x1x32x16xf32>
    %169 = vector.shape_cast %168 : vector<1x1x1x32x16xf32> to vector<32x16xf32>
    %cst_113 = arith.constant dense<0.000000e+00> : vector<16x16xf32>
    %170 = tpu.matmul %163, %169, %cst_113 {dimension_numbers = #tpu.dot_dimension_numbers<[1], [0], [0], [1], [0, 0, 1, 1], [], []>} : vector<16x32xf32>, vector<32x16xf32>, vector<16x16xf32> -> vector<16x16xf32>
    %c1_114 = arith.constant 1 : index
    %c0_115 = arith.constant 0 : index
    %c2_116 = arith.constant 2 : index
    %c0_117 = arith.constant 0 : index
    %c0_118 = arith.constant 0 : index
    %171 = vector.load %arg1[%c1_114, %c0_115, %c2_116, %c0_117, %c0_118] : memref<2x2x4x32x16xf32, #tpu.memory_space<vmem>>, vector<1x1x1x32x16xf32>
    %172 = vector.shape_cast %171 : vector<1x1x1x32x16xf32> to vector<32x16xf32>
    %cst_119 = arith.constant dense<0.000000e+00> : vector<16x16xf32>
    %173 = tpu.matmul %163, %172, %cst_119 {dimension_numbers = #tpu.dot_dimension_numbers<[1], [0], [0], [1], [0, 0, 1, 1], [], []>} : vector<16x32xf32>, vector<32x16xf32>, vector<16x16xf32> -> vector<16x16xf32>
    %174 = vector.shape_cast %167 : vector<16x16xf32> to vector<2x8x16xf32>
    %175 = vector.shape_cast %170 : vector<16x16xf32> to vector<2x8x16xf32>
    %176 = vector.shape_cast %173 : vector<16x16xf32> to vector<2x8x16xf32>
    "tpu.trace_start"() <{level = 10 : i32, message = "bqd,bkd->bqk"}> : () -> ()
    %cst_120 = arith.constant dense<0.000000e+00> : vector<2x8x8xf32>
    %177 = tpu.matmul %174, %175, %cst_120 {dimension_numbers = #tpu.dot_dimension_numbers<[2], [2], [1], [1], [0, 0, 0, 1, 1, 1], [0], [0]>} : vector<2x8x16xf32>, vector<2x8x16xf32>, vector<2x8x8xf32> -> vector<2x8x8xf32>
    "tpu.trace_stop"() : () -> ()
    %cst_121 = arith.constant 2.500000e-01 : f32
    %178 = vector.broadcast %cst_121 : f32 to vector<2x8x8xf32>
    %179 = arith.mulf %177, %178 : vector<2x8x8xf32>
    %180 = vector.broadcast %6 : vector<2x1x8xf32> to vector<2x8x8xf32>
    %181 = arith.addf %179, %180 : vector<2x8x8xf32>
    %cst_122 = arith.constant dense<0xFF800000> : vector<2x8xf32>
    %182 = vector.multi_reduction <maximumf>, %181, %cst_122 [2] : vector<2x8x8xf32> to vector<2x8xf32>
    %183 = vector.shape_cast %182 : vector<2x8xf32> to vector<2x8x1xf32>
    %184 = vector.broadcast %183 : vector<2x8x1xf32> to vector<2x8x8xf32>
    %185 = arith.subf %181, %184 : vector<2x8x8xf32>
    %186 = math.exp %185 : vector<2x8x8xf32>
    %cst_123 = arith.constant dense<0.000000e+00> : vector<2x8xf32>
    %187 = vector.multi_reduction <add>, %186, %cst_123 [2] : vector<2x8x8xf32> to vector<2x8xf32>
    %188 = vector.shape_cast %187 : vector<2x8xf32> to vector<2x8x1xf32>
    %189 = vector.broadcast %188 : vector<2x8x1xf32> to vector<2x8x8xf32>
    %190 = arith.divf %186, %189 : vector<2x8x8xf32>
    "tpu.trace_start"() <{level = 10 : i32, message = "bqk,bkd->bqd"}> : () -> ()
    %cst_124 = arith.constant dense<0.000000e+00> : vector<2x8x16xf32>
    %191 = tpu.matmul %190, %176, %cst_124 {dimension_numbers = #tpu.dot_dimension_numbers<[2], [1], [1], [2], [0, 0, 0, 1, 1, 2], [0], [0]>} : vector<2x8x8xf32>, vector<2x8x16xf32>, vector<2x8x16xf32> -> vector<2x8x16xf32>
    "tpu.trace_stop"() : () -> ()
    %192 = vector.shape_cast %191 : vector<2x8x16xf32> to vector<16x16xf32>
    %c1_125 = arith.constant 1 : index
    %c0_126 = arith.constant 0 : index
    %c3_127 = arith.constant 3 : index
    %c0_128 = arith.constant 0 : index
    %c0_129 = arith.constant 0 : index
    %193 = vector.load %arg1[%c1_125, %c0_126, %c3_127, %c0_128, %c0_129] : memref<2x2x4x32x16xf32, #tpu.memory_space<vmem>>, vector<1x1x1x32x16xf32>
    %194 = vector.shape_cast %193 : vector<1x1x1x32x16xf32> to vector<32x16xf32>
    "tpu.trace_start"() <{level = 10 : i32, message = "nh,dh->nd"}> : () -> ()
    %cst_130 = arith.constant dense<0.000000e+00> : vector<16x32xf32>
    %195 = tpu.matmul %192, %194, %cst_130 {dimension_numbers = #tpu.dot_dimension_numbers<[1], [1], [0], [0], [0, 0, 1, 0], [], []>} : vector<16x16xf32>, vector<32x16xf32>, vector<16x32xf32> -> vector<16x32xf32>
    "tpu.trace_stop"() : () -> ()
    %196 = arith.addf %164, %195 : vector<16x32xf32>
    %c1_131 = arith.constant 1 : index
    %c1_132 = arith.constant 1 : index
    %c0_133 = arith.constant 0 : index
    %c0_134 = arith.constant 0 : index
    %c0_135 = arith.constant 0 : index
    %197 = vector.load %arg1[%c1_131, %c1_132, %c0_133, %c0_134, %c0_135] : memref<2x2x4x32x16xf32, #tpu.memory_space<vmem>>, vector<1x1x1x32x16xf32>
    %198 = vector.shape_cast %197 : vector<1x1x1x32x16xf32> to vector<32x16xf32>
    %cst_136 = arith.constant dense<0.000000e+00> : vector<16x16xf32>
    %199 = tpu.matmul %163, %198, %cst_136 {dimension_numbers = #tpu.dot_dimension_numbers<[1], [0], [0], [1], [0, 0, 1, 1], [], []>} : vector<16x32xf32>, vector<32x16xf32>, vector<16x16xf32> -> vector<16x16xf32>
    %c1_137 = arith.constant 1 : index
    %c1_138 = arith.constant 1 : index
    %c1_139 = arith.constant 1 : index
    %c0_140 = arith.constant 0 : index
    %c0_141 = arith.constant 0 : index
    %200 = vector.load %arg1[%c1_137, %c1_138, %c1_139, %c0_140, %c0_141] : memref<2x2x4x32x16xf32, #tpu.memory_space<vmem>>, vector<1x1x1x32x16xf32>
    %201 = vector.shape_cast %200 : vector<1x1x1x32x16xf32> to vector<32x16xf32>
    %cst_142 = arith.constant dense<0.000000e+00> : vector<16x16xf32>
    %202 = tpu.matmul %163, %201, %cst_142 {dimension_numbers = #tpu.dot_dimension_numbers<[1], [0], [0], [1], [0, 0, 1, 1], [], []>} : vector<16x32xf32>, vector<32x16xf32>, vector<16x16xf32> -> vector<16x16xf32>
    %c1_143 = arith.constant 1 : index
    %c1_144 = arith.constant 1 : index
    %c2_145 = arith.constant 2 : index
    %c0_146 = arith.constant 0 : index
    %c0_147 = arith.constant 0 : index
    %203 = vector.load %arg1[%c1_143, %c1_144, %c2_145, %c0_146, %c0_147] : memref<2x2x4x32x16xf32, #tpu.memory_space<vmem>>, vector<1x1x1x32x16xf32>
    %204 = vector.shape_cast %203 : vector<1x1x1x32x16xf32> to vector<32x16xf32>
    %cst_148 = arith.constant dense<0.000000e+00> : vector<16x16xf32>
    %205 = tpu.matmul %163, %204, %cst_148 {dimension_numbers = #tpu.dot_dimension_numbers<[1], [0], [0], [1], [0, 0, 1, 1], [], []>} : vector<16x32xf32>, vector<32x16xf32>, vector<16x16xf32> -> vector<16x16xf32>
    %206 = vector.shape_cast %199 : vector<16x16xf32> to vector<2x8x16xf32>
    %207 = vector.shape_cast %202 : vector<16x16xf32> to vector<2x8x16xf32>
    %208 = vector.shape_cast %205 : vector<16x16xf32> to vector<2x8x16xf32>
    "tpu.trace_start"() <{level = 10 : i32, message = "bqd,bkd->bqk"}> : () -> ()
    %cst_149 = arith.constant dense<0.000000e+00> : vector<2x8x8xf32>
    %209 = tpu.matmul %206, %207, %cst_149 {dimension_numbers = #tpu.dot_dimension_numbers<[2], [2], [1], [1], [0, 0, 0, 1, 1, 1], [0], [0]>} : vector<2x8x16xf32>, vector<2x8x16xf32>, vector<2x8x8xf32> -> vector<2x8x8xf32>
    "tpu.trace_stop"() : () -> ()
    %cst_150 = arith.constant 2.500000e-01 : f32
    %210 = vector.broadcast %cst_150 : f32 to vector<2x8x8xf32>
    %211 = arith.mulf %209, %210 : vector<2x8x8xf32>
    %212 = vector.broadcast %6 : vector<2x1x8xf32> to vector<2x8x8xf32>
    %213 = arith.addf %211, %212 : vector<2x8x8xf32>
    %cst_151 = arith.constant dense<0xFF800000> : vector<2x8xf32>
    %214 = vector.multi_reduction <maximumf>, %213, %cst_151 [2] : vector<2x8x8xf32> to vector<2x8xf32>
    %215 = vector.shape_cast %214 : vector<2x8xf32> to vector<2x8x1xf32>
    %216 = vector.broadcast %215 : vector<2x8x1xf32> to vector<2x8x8xf32>
    %217 = arith.subf %213, %216 : vector<2x8x8xf32>
    %218 = math.exp %217 : vector<2x8x8xf32>
    %cst_152 = arith.constant dense<0.000000e+00> : vector<2x8xf32>
    %219 = vector.multi_reduction <add>, %218, %cst_152 [2] : vector<2x8x8xf32> to vector<2x8xf32>
    %220 = vector.shape_cast %219 : vector<2x8xf32> to vector<2x8x1xf32>
    %221 = vector.broadcast %220 : vector<2x8x1xf32> to vector<2x8x8xf32>
    %222 = arith.divf %218, %221 : vector<2x8x8xf32>
    "tpu.trace_start"() <{level = 10 : i32, message = "bqk,bkd->bqd"}> : () -> ()
    %cst_153 = arith.constant dense<0.000000e+00> : vector<2x8x16xf32>
    %223 = tpu.matmul %222, %208, %cst_153 {dimension_numbers = #tpu.dot_dimension_numbers<[2], [1], [1], [2], [0, 0, 0, 1, 1, 2], [0], [0]>} : vector<2x8x8xf32>, vector<2x8x16xf32>, vector<2x8x16xf32> -> vector<2x8x16xf32>
    "tpu.trace_stop"() : () -> ()
    %224 = vector.shape_cast %223 : vector<2x8x16xf32> to vector<16x16xf32>
    %c1_154 = arith.constant 1 : index
    %c1_155 = arith.constant 1 : index
    %c3_156 = arith.constant 3 : index
    %c0_157 = arith.constant 0 : index
    %c0_158 = arith.constant 0 : index
    %225 = vector.load %arg1[%c1_154, %c1_155, %c3_156, %c0_157, %c0_158] : memref<2x2x4x32x16xf32, #tpu.memory_space<vmem>>, vector<1x1x1x32x16xf32>
    %226 = vector.shape_cast %225 : vector<1x1x1x32x16xf32> to vector<32x16xf32>
    "tpu.trace_start"() <{level = 10 : i32, message = "nh,dh->nd"}> : () -> ()
    %cst_159 = arith.constant dense<0.000000e+00> : vector<16x32xf32>
    %227 = tpu.matmul %224, %226, %cst_159 {dimension_numbers = #tpu.dot_dimension_numbers<[1], [1], [0], [0], [0, 0, 1, 0], [], []>} : vector<16x16xf32>, vector<32x16xf32>, vector<16x32xf32> -> vector<16x32xf32>
    "tpu.trace_stop"() : () -> ()
    %228 = arith.addf %196, %227 : vector<16x32xf32>
    %229 = arith.addf %135, %228 : vector<16x32xf32>
    %cst_160 = arith.constant dense<0.000000e+00> : vector<16xf32>
    %230 = vector.multi_reduction <add>, %229, %cst_160 [1] : vector<16x32xf32> to vector<16xf32>
    %231 = vector.shape_cast %230 : vector<16xf32> to vector<16x1xf32>
    %cst_161 = arith.constant 3.200000e+01 : f32
    %232 = vector.broadcast %cst_161 : f32 to vector<16x1xf32>
    %233 = arith.divf %231, %232 : vector<16x1xf32>
    %234 = vector.broadcast %233 : vector<16x1xf32> to vector<16x32xf32>
    %235 = arith.subf %229, %234 : vector<16x32xf32>
    %236 = arith.mulf %235, %235 : vector<16x32xf32>
    %cst_162 = arith.constant dense<0.000000e+00> : vector<16xf32>
    %237 = vector.multi_reduction <add>, %236, %cst_162 [1] : vector<16x32xf32> to vector<16xf32>
    %238 = vector.shape_cast %237 : vector<16xf32> to vector<16x1xf32>
    %cst_163 = arith.constant 3.200000e+01 : f32
    %239 = vector.broadcast %cst_163 : f32 to vector<16x1xf32>
    %240 = arith.divf %238, %239 : vector<16x1xf32>
    %241 = vector.broadcast %233 : vector<16x1xf32> to vector<16x32xf32>
    %242 = arith.subf %229, %241 : vector<16x32xf32>
    %cst_164 = arith.constant 9.99999997E-7 : f32
    %243 = vector.broadcast %cst_164 : f32 to vector<16x1xf32>
    %244 = arith.addf %240, %243 : vector<16x1xf32>
    %245 = math.rsqrt %244 : vector<16x1xf32>
    %246 = vector.broadcast %245 : vector<16x1xf32> to vector<16x32xf32>
    %247 = arith.mulf %242, %246 : vector<16x32xf32>
    %248 = vector.broadcast %138 : vector<1x32xf32> to vector<16x32xf32>
    %249 = arith.mulf %247, %248 : vector<16x32xf32>
    %250 = vector.broadcast %139 : vector<1x32xf32> to vector<16x32xf32>
    %251 = arith.addf %249, %250 : vector<16x32xf32>
    %c1_165 = arith.constant 1 : index
    %c0_166 = arith.constant 0 : index
    %c0_167 = arith.constant 0 : index
    %c0_168 = arith.constant 0 : index
    %252 = vector.load %arg2[%c1_165, %c0_166, %c0_167, %c0_168] : memref<2x2x32x64xf32, #tpu.memory_space<vmem>>, vector<1x1x32x64xf32>
    %253 = vector.shape_cast %252 : vector<1x1x32x64xf32> to vector<32x64xf32>
    %cst_169 = arith.constant dense<0.000000e+00> : vector<16x64xf32>
    %254 = tpu.matmul %251, %253, %cst_169 {dimension_numbers = #tpu.dot_dimension_numbers<[1], [0], [0], [1], [0, 0, 1, 1], [], []>} : vector<16x32xf32>, vector<32x64xf32>, vector<16x64xf32> -> vector<16x64xf32>
    %255 = vector.broadcast %140 : vector<1x64xf32> to vector<16x64xf32>
    %256 = arith.addf %254, %255 : vector<16x64xf32>
    %cst_170 = arith.constant 0.000000e+00 : f32
    %257 = vector.broadcast %cst_170 : f32 to vector<16x64xf32>
    %258 = arith.maximumf %256, %257 : vector<16x64xf32>
    %c1_171 = arith.constant 1 : index
    %c1_172 = arith.constant 1 : index
    %c0_173 = arith.constant 0 : index
    %c0_174 = arith.constant 0 : index
    %259 = vector.load %arg2[%c1_171, %c1_172, %c0_173, %c0_174] : memref<2x2x32x64xf32, #tpu.memory_space<vmem>>, vector<1x1x32x64xf32>
    %260 = vector.shape_cast %259 : vector<1x1x32x64xf32> to vector<32x64xf32>
    "tpu.trace_start"() <{level = 10 : i32, message = "nf,df->nd"}> : () -> ()
    %cst_175 = arith.constant dense<0.000000e+00> : vector<16x32xf32>
    %261 = tpu.matmul %258, %260, %cst_175 {dimension_numbers = #tpu.dot_dimension_numbers<[1], [1], [0], [0], [0, 0, 1, 0], [], []>} : vector<16x64xf32>, vector<32x64xf32>, vector<16x32xf32> -> vector<16x32xf32>
    "tpu.trace_stop"() : () -> ()
    %262 = arith.addf %229, %261 : vector<16x32xf32>
    %263 = vector.broadcast %141 : vector<1x32xf32> to vector<16x32xf32>
    %264 = arith.addf %262, %263 : vector<16x32xf32>
    %c12 = arith.constant 12 : index
    %c0_176 = arith.constant 0 : index
    %265 = vector.load %arg3[%c12, %c0_176] : memref<72x128xf32, #tpu.memory_space<vmem>>, vector<1x32xf32>
    %c13 = arith.constant 13 : index
    %c0_177 = arith.constant 0 : index
    %266 = vector.load %arg3[%c13, %c0_177] : memref<72x128xf32, #tpu.memory_space<vmem>>, vector<1x32xf32>
    %c14 = arith.constant 14 : index
    %c0_178 = arith.constant 0 : index
    %267 = vector.load %arg3[%c14, %c0_178] : memref<72x128xf32, #tpu.memory_space<vmem>>, vector<1x10xf32>
    %c24 = arith.constant 24 : index
    %c0_179 = arith.constant 0 : index
    %268 = vector.load %arg3[%c24, %c0_179] : memref<72x128xf32, #tpu.memory_space<vmem>>, vector<10x32xf32>
    %c40 = arith.constant 40 : index
    %c0_180 = arith.constant 0 : index
    %269 = vector.load %arg3[%c40, %c0_180] : memref<72x128xf32, #tpu.memory_space<vmem>>, vector<16x1xf32>
    %c56 = arith.constant 56 : index
    %c0_181 = arith.constant 0 : index
    %270 = vector.load %arg3[%c56, %c0_181] : memref<72x128xf32, #tpu.memory_space<vmem>>, vector<16x1xf32>
    %cst_182 = arith.constant dense<0.000000e+00> : vector<16xf32>
    %271 = vector.multi_reduction <add>, %264, %cst_182 [1] : vector<16x32xf32> to vector<16xf32>
    %272 = vector.shape_cast %271 : vector<16xf32> to vector<16x1xf32>
    %cst_183 = arith.constant 3.200000e+01 : f32
    %273 = vector.broadcast %cst_183 : f32 to vector<16x1xf32>
    %274 = arith.divf %272, %273 : vector<16x1xf32>
    %275 = vector.broadcast %274 : vector<16x1xf32> to vector<16x32xf32>
    %276 = arith.subf %264, %275 : vector<16x32xf32>
    %277 = arith.mulf %276, %276 : vector<16x32xf32>
    %cst_184 = arith.constant dense<0.000000e+00> : vector<16xf32>
    %278 = vector.multi_reduction <add>, %277, %cst_184 [1] : vector<16x32xf32> to vector<16xf32>
    %279 = vector.shape_cast %278 : vector<16xf32> to vector<16x1xf32>
    %cst_185 = arith.constant 3.200000e+01 : f32
    %280 = vector.broadcast %cst_185 : f32 to vector<16x1xf32>
    %281 = arith.divf %279, %280 : vector<16x1xf32>
    %282 = vector.broadcast %274 : vector<16x1xf32> to vector<16x32xf32>
    %283 = arith.subf %264, %282 : vector<16x32xf32>
    %cst_186 = arith.constant 9.99999997E-7 : f32
    %284 = vector.broadcast %cst_186 : f32 to vector<16x1xf32>
    %285 = arith.addf %281, %284 : vector<16x1xf32>
    %286 = math.rsqrt %285 : vector<16x1xf32>
    %287 = vector.broadcast %286 : vector<16x1xf32> to vector<16x32xf32>
    %288 = arith.mulf %283, %287 : vector<16x32xf32>
    %289 = vector.broadcast %265 : vector<1x32xf32> to vector<16x32xf32>
    %290 = arith.mulf %288, %289 : vector<16x32xf32>
    %291 = vector.broadcast %266 : vector<1x32xf32> to vector<16x32xf32>
    %292 = arith.addf %290, %291 : vector<16x32xf32>
    "tpu.trace_start"() <{level = 10 : i32, message = "nd,ld->nl"}> : () -> ()
    %cst_187 = arith.constant dense<0.000000e+00> : vector<16x10xf32>
    %293 = tpu.matmul %292, %268, %cst_187 {dimension_numbers = #tpu.dot_dimension_numbers<[1], [1], [0], [0], [0, 0, 1, 0], [], []>} : vector<16x32xf32>, vector<10x32xf32>, vector<16x10xf32> -> vector<16x10xf32>
    "tpu.trace_stop"() : () -> ()
    %294 = vector.broadcast %267 : vector<1x10xf32> to vector<16x10xf32>
    %295 = arith.addf %293, %294 : vector<16x10xf32>
    %cst_188 = arith.constant dense<0xFF800000> : vector<16xf32>
    %296 = vector.multi_reduction <maximumf>, %295, %cst_188 [1] : vector<16x10xf32> to vector<16xf32>
    %297 = vector.shape_cast %296 : vector<16xf32> to vector<16x1xf32>
    %298 = vector.broadcast %297 : vector<16x1xf32> to vector<16x10xf32>
    %299 = arith.subf %295, %298 : vector<16x10xf32>
    %300 = math.exp %299 : vector<16x10xf32>
    %cst_189 = arith.constant dense<0.000000e+00> : vector<16xf32>
    %301 = vector.multi_reduction <add>, %300, %cst_189 [1] : vector<16x10xf32> to vector<16xf32>
    %302 = vector.shape_cast %301 : vector<16xf32> to vector<16x1xf32>
    %303 = math.log %302 : vector<16x1xf32>
    %304 = arith.addf %303, %297 : vector<16x1xf32>
    %305 = vector.broadcast %304 : vector<16x1xf32> to vector<16x10xf32>
    %306 = arith.subf %295, %305 : vector<16x10xf32>
    %307 = tpu.iota {dimensions = array<i32: 1>} : vector<16x10xi32>
    %308 = arith.fptosi %269 : vector<16x1xf32> to vector<16x1xi32>
    %309 = vector.broadcast %308 : vector<16x1xi32> to vector<16x10xi32>
    %310 = arith.cmpi eq, %307, %309 : vector<16x10xi32>
    %311 = arith.extui %310 : vector<16x10xi1> to vector<16x10xi32>
    %312 = arith.sitofp %311 : vector<16x10xi32> to vector<16x10xf32>
    %313 = arith.mulf %312, %306 : vector<16x10xf32>
    %cst_190 = arith.constant dense<0.000000e+00> : vector<16xf32>
    %314 = vector.multi_reduction <add>, %313, %cst_190 [1] : vector<16x10xf32> to vector<16xf32>
    %315 = vector.shape_cast %314 : vector<16xf32> to vector<16x1xf32>
    %cst_191 = arith.constant dense<0.000000e+00> : vector<16xf32>
    %316 = vector.multi_reduction <add>, %306, %cst_191 [1] : vector<16x10xf32> to vector<16xf32>
    %317 = vector.shape_cast %316 : vector<16xf32> to vector<16x1xf32>
    %cst_192 = arith.constant 0.888888895 : f32
    %318 = vector.broadcast %cst_192 : f32 to vector<16x1xf32>
    %319 = arith.mulf %318, %315 : vector<16x1xf32>
    %cst_193 = arith.constant 0.0111111114 : f32
    %320 = vector.broadcast %cst_193 : f32 to vector<16x1xf32>
    %321 = arith.mulf %320, %317 : vector<16x1xf32>
    %322 = arith.addf %319, %321 : vector<16x1xf32>
    %cst_194 = arith.constant 0.000000e+00 : f32
    %323 = vector.broadcast %cst_194 : f32 to vector<16x1xf32>
    %324 = arith.subf %323, %322 : vector<16x1xf32>
    %cst_195 = arith.constant 0.544805408 : f32
    %325 = vector.broadcast %cst_195 : f32 to vector<16x1xf32>
    %326 = arith.subf %324, %325 : vector<16x1xf32>
    %327 = arith.mulf %326, %270 : vector<16x1xf32>
    %328 = vector.shape_cast %327 : vector<16x1xf32> to vector<1x16x1xf32>
    %cst_196 = arith.constant dense<0.000000e+00> : vector<1xf32>
    %329 = vector.multi_reduction <add>, %328, %cst_196 [1, 2] : vector<1x16x1xf32> to vector<1xf32>
    %330 = vector.shape_cast %329 : vector<1xf32> to vector<1x1x1xf32>
    %331 = vector.extract %330[0, 0, 0] : f32 from vector<1x1x1xf32>
    %332 = vector.shape_cast %270 : vector<16x1xf32> to vector<1x16x1xf32>
    %cst_197 = arith.constant dense<0.000000e+00> : vector<1xf32>
    %333 = vector.multi_reduction <add>, %332, %cst_197 [1, 2] : vector<1x16x1xf32> to vector<1xf32>
    %334 = vector.shape_cast %333 : vector<1xf32> to vector<1x1x1xf32>
    %335 = vector.extract %334[0, 0, 0] : f32 from vector<1x1x1xf32>
    %cst_198 = arith.constant 1.000000e+00 : f32
    %336 = arith.maximumf %335, %cst_198 : f32
    %337 = arith.divf %331, %336 : f32
    %c0_199 = arith.constant 0 : index
    %c0_200 = arith.constant 0 : index
    %338 = memref.load %arg4[%c0_199, %c0_200] : memref<1x1xf32, #tpu.memory_space<smem>>
    memref.store %337, %arg4[%c0_199, %c0_200] : memref<1x1xf32, #tpu.memory_space<smem>>
    return
  }
}

</mosaic_0001>

<bundles_post_ra>
// kernel: deepattn_forward.1
= control target key start
LH: loop header
LB: loop body
LE: loop exit
PB: predicated region body
PF: predicated region fallthrough
CT: control target
= control target key end

     0   :  { %vm31_vm0 = vcmask 261120   ;;  %s2686_s0 = inlined_call_operand.vmem [shape: f32[16,32], index: 0, kind: input, shape index: {}]   ;;  %s2687_s1 = inlined_call_operand.vmem [shape: f32[2,2,4,32,16], index: 1, kind: input, shape index: {}]   ;;  %s2688_s2 = inlined_call_operand.vmem [shape: f32[2,2,32,64], index: 2, kind: input, shape index: {}]   ;;  %s2689_s3 = inlined_call_operand.vmem [shape: f32[72,128], index: 3, kind: input, shape index: {}]   ;;  %s2690_s4 = inlined_call_operand.hbm [shape: f32[1,1], index: 4, kind: output, shape index: {}]  }
   0x1   :  { %v2105_v0 = vld [vmem:[%s2686_s0] sm:$0xff]  ;;  %v2112_v2 = vld [vmem:[%s2686_s0 + $0x8] sm:$0xff] }
   0x2   :  { %v32_v1 = vsel %vm31_vm0, %v2105_v0, 0.0 }
   0x3   :  { %33 = vadd.xlane.f32.xlu0 %v32_v1 }
   0x4   :  { %9 = vsyncpa [#allocation3], 0  ;;  %v35_v3 = vsel %vm31_vm0, %v2112_v2, 0.0  ;;  %v2072_v4 = vmov 32.0   ;;  %v92_v21 = vld [vmem:[%s2687_s1 + $0x18] sm:$0xff]  ;;  %v91_v24 = vld [vmem:[%s2687_s1 + $0x10] sm:$0xff] }
   0x5   :  { %1994 = vrcp.f32 %v2072_v4  ;;  %v1792_v22 = vld [vmem:[%s2687_s1 + $0x38] sm:$0xff]  ;;  %111 = vmatpush.msra.mxu0 %v92_v21  ;;  %v1791_v25 = vld [vmem:[%s2687_s1 + $0x30] sm:$0xff]  ;;  %v90_v27 = vld [vmem:[%s2687_s1 + $0x8] sm:$0xff]  ;;  %vm178_vm8 = vcmask 130048   ;;  %vm239_vm9 = vcmask 64512   ;;  %s2075_s5 = smov 1.0  }
   0x6   :  { %v1798_v23 = vld [vmem:[%s2687_s1 + $0x58] sm:$0xff]  ;;  %139 = vmatpush.msra.mxu1 %v1792_v22  ;;  %v1797_v26 = vld [vmem:[%s2687_s1 + $0x50] sm:$0xff]  ;;  %v1790_v28 = vld [vmem:[%s2687_s1 + $0x28] sm:$0xff]  ;;  %s1776_s9 = sshll.u32 %s2690_s4, 4  ;;  %s2076_s12 = smov [#allocation2]   ;;  %s1777_s9 = int_to_ptr.hbm [resolvable:$true] %s1776_s9 }
   0x7   :  { %167 = vmatpush.msra.mxu2 %v1798_v23  ;;  %112 = vmatpush.msra.mxu0 %v91_v24  ;;  %v1796_v29 = vld [vmem:[%s2687_s1 + $0x48] sm:$0xff]  ;;  %v89_v30 = vld [vmem:[%s2687_s1] sm:$0xff]  ;;  %v1814_v36 = vld [vmem:[%s2687_s1 + $0x98] sm:$0xff] }
   0x8   :  { %140 = vmatpush.msra.mxu1 %v1791_v25  ;;  %v1789_v31 = vld [vmem:[%s2687_s1 + $0x20] sm:$0xff]  ;;  %v1820_v37 = vld [vmem:[%s2687_s1 + $0xb8] sm:$0xff]  ;;  %v1813_v38 = vld [vmem:[%s2687_s1 + $0x90] sm:$0xff] }
   0x9   :  { %168 = vmatpush.msra.mxu2 %v1797_v26  ;;  %113 = vmatpush.msra.mxu0 %v90_v27  ;;  %v1795_v32 = vld [vmem:[%s2687_s1 + $0x40] sm:$0xff]  ;;  %v1819_v39 = vld [vmem:[%s2687_s1 + $0xb0] sm:$0xff]  ;;  %v1812_v41 = vld [vmem:[%s2687_s1 + $0x88] sm:$0xff] }
   0xa   :  { %141 = vmatpush.msra.mxu1 %v1790_v28  ;;  %v1818_v42 = vld [vmem:[%s2687_s1 + $0xa8] sm:$0xff]  ;;  %v1811_v44 = vld [vmem:[%s2687_s1 + $0x80] sm:$0xff] }
   0xb   :  { %36 = vadd.xlane.f32.xlu0 %v35_v3  ;;  %v1995_v5 = vpop.eup %1994  ;;  %169 = vmatpush.msra.mxu2 %v1796_v29  ;;  %v1817_v45 = vld [vmem:[%s2687_s1 + $0xa0] sm:$0xff] }
   0xc   :  { %v39_v6 = vmul.f32 32.0, %v1995_v5  ;;  %vm43_vm1 = vweird.f32 %v1995_v5  ;;  %114 = vmatpush.msra.mxu0 %v89_v30  ;;  %142 = vmatpush.msra.mxu1 %v1789_v31  ;;  %v1979_v55 = vld [vmem:[%s2689_s3] ss:$0 sm:$0xff]  ;;  %v1980_v58 = vld [vmem:[%s2689_s3 + $0x1] ss:$0 sm:$0xff] }
   0xd   :  { %170 = vmatpush.msra.mxu2 %v1795_v32 }
   0xe   :  { %v40_v7 = vsub.f32 1.0, %v39_v6  ;;  %356 = vmatpush.msrb.mxu1 %v1814_v36 }
   0xf   :  { %384 = vmatpush.msrb.mxu2 %v1820_v37 }
  0x10   :  { %v41_v8 = vmul.f32 %v1995_v5, %v40_v7  ;;  %357 = vmatpush.msrb.mxu1 %v1813_v38 }
  0x11   :  { %385 = vmatpush.msrb.mxu2 %v1819_v39 }
  0x12   :  { %v42_v9 = vadd.f32 %v1995_v5, %v41_v8  ;;  %358 = vmatpush.msrb.mxu1 %v1812_v41 }
  0x13   :  { %386 = vmatpush.msrb.mxu2 %v1818_v42 }
  0x14   :  { %v2116_v10 = vsel %vm43_vm1, %v1995_v5, %v42_v9  ;;  %359 = vmatpush.msrb.mxu1 %v1811_v44 }
  0x15   :  { %387 = vmatpush.msrb.mxu2 %v1817_v45 }
  0x76   :  { %v34_v11 = vpop.xlane.xlu0 %33 }
  0x77   :  { %v45_v12 = vmul.f32 %v2116_v10, %v34_v11 }
  0x79   :  { %v2120_v13 = vsub.f32 %v2105_v0, %v45_v12 }
  0x7b   :  { %v49_v14 = vmul.f32 %v2120_v13, %v2120_v13 }
  0x7d   :  { %v51_v15 = vsel %vm31_vm0, %v49_v14, 0.0 }
  0x7e   :  { %52 = vadd.xlane.f32.xlu1 %v51_v15  ;;  %v37_v16 = vpop.xlane.xlu0 %36 }
  0x7f   :  { %v46_v17 = vmul.f32 %v2116_v10, %v37_v16 }
  0x81   :  { %v2127_v18 = vsub.f32 %v2112_v2, %v46_v17 }
  0x83   :  { %v50_v19 = vmul.f32 %v2127_v18, %v2127_v18 }
  0x85   :  { %v54_v20 = vsel %vm31_vm0, %v50_v19, 0.0 }
  0x86   :  { %55 = vadd.xlane.f32.xlu1 %v54_v20 }
  0xf1   :  { %v53_v33 = vpop.xlane.xlu1 %52 }
  0xf2   :  { %v57_v34 = vmul.f32 %v53_v33, %v2116_v10 }
  0xf4   :  { %v59_v35 = vadd.f32 1e-06, %v57_v34 }
  0xf6   :  { %1996 = vrsqrt.f32 %v59_v35  ;;  %vm67_vm3 = vweird.f32 %v59_v35 }
  0xf9   :  { %v56_v40 = vpop.xlane.xlu1 %55 }
  0xfa   :  { %v58_v43 = vmul.f32 %v56_v40, %v2116_v10 }
  0xfc   :  { %v1997_v46 = vpop.eup %1996  ;;  %v60_v47 = vadd.f32 1e-06, %v58_v43 }
  0xfd   :  { %v62_v48 = vmul.f32 %v1997_v46, %v59_v35  ;;  %vm68_vm2 = vweird.f32 %v1997_v46 }
  0xfe   :  { %1998 = vrsqrt.f32 %v60_v47  ;;  %vm69_vm4 = vmor %vm67_vm3, %vm68_vm2  ;;  %vm77_vm6 = vweird.f32 %v60_v47 }
  0xff   :  { %v63_v49 = vmul.f32 %v1997_v46, %v62_v48 }
 0x101   :  { %v64_v50 = vmul.f32 0.5, %v63_v49 }
 0x103   :  { %v65_v51 = vsub.f32 1.5, %v64_v50 }
 0x104   :  { %v1999_v52 = vpop.eup %1998 }
 0x105   :  { %v66_v53 = vmul.f32 %v1997_v46, %v65_v51  ;;  %v72_v54 = vmul.f32 %v1999_v52, %v60_v47  ;;  %vm78_vm5 = vweird.f32 %v1999_v52 }
 0x106   :  { %vm79_vm7 = vmor %vm77_vm6, %vm78_vm5 }
 0x107   :  { %v70_v56 = vsel %vm69_vm4, %v1997_v46, %v66_v53  ;;  %v73_v57 = vmul.f32 %v1999_v52, %v72_v54 }
 0x108   :  { %v81_v59 = vmul.f32 %v70_v56, %v2120_v13 }
 0x109   :  { %v74_v60 = vmul.f32 0.5, %v73_v57 }
 0x10a   :  { %v84_v61 = vmul.f32 %v1979_v55, %v81_v59 }
 0x10b   :  { %v75_v62 = vsub.f32 1.5, %v74_v60 }
 0x10c   :  { %v2201_v63 = vadd.f32 %v1980_v58, %v84_v61 }
 0x10d   :  { %v76_v1 = vmul.f32 %v1999_v52, %v75_v62 }
 0x10e   :  { %1787 = vmatmul.msk.f32.vlgmr.msra.gmra.mxu0 %vm31_vm0, %v2201_v63  ;;  %1793 = vmatmul.msk.f32.vlgmr.msra.gmra.mxu1 %vm31_vm0, %v2201_v63 }
 0x10f   :  { %v80_v3 = vsel %vm79_vm7, %v1999_v52, %v76_v1  ;;  %1799 = vmatmul.msk.f32.vlgmr.msra.gmra.mxu2 %vm31_vm0, %v2201_v63 }
 0x110   :  { %v82_v4 = vmul.f32 %v80_v3, %v2127_v18  ;;  %v20_v18 = vld [vmem:[%s2689_s3 + $0x10] sm:$0x3] }
 0x111   :  { %v1786_v19 = vadd.f32 -1.0, %v20_v18 }
 0x112   :  { %v85_v5 = vmul.f32 %v1979_v55, %v82_v4 }
 0x113   :  { %v22_v20 = vmul.f32 1e+09, %v1786_v19 }
 0x114   :  { %v2210_v6 = vadd.f32 %v1980_v58, %v85_v5 }
 0x115   :  { %v2237_v21 = vperm.slane %v22_v20, 0  ;;  %v24_v25 = vrot.slane %v22_v20, 1 }
 0x116   :  { %1788 = vmatmul.msk.f32.gmra.mxu0 %vm31_vm0, %v2210_v6  ;;  %1794 = vmatmul.msk.f32.gmra.mxu1 %vm31_vm0, %v2210_v6 }
 0x117   :  { %1800 = vmatmul.msk.f32.gmra.mxu2 %vm31_vm0, %v2210_v6  ;;  %v2241_v27 = vperm.slane %v24_v25, 0  ;;  %v1824_v25 = vld [vmem:[%s2687_s1 + $0xc8] sm:$0xff] }
 0x11e   :  { %1815 = vmatmul.msk.f32.vlgmr.msrb.gmra.mxu1 %vm31_vm0, %v2201_v63 }
 0x11f   :  { %1821 = vmatmul.msk.f32.vlgmr.msrb.gmra.mxu2 %vm31_vm0, %v2201_v63 }
 0x126   :  { %1816 = vmatmul.msk.f32.gmra.mxu1 %vm31_vm0, %v2210_v6 }
 0x127   :  { %1822 = vmatmul.msk.f32.gmra.mxu2 %vm31_vm0, %v2210_v6 }
 0x18b   :  { %v144_v7 = vpop.f32.mrf.mxu1  ;;  %v116_v8 = vpop.f32.mrf.mxu0 }
 0x18c   :  { %1801 = vmatpush.xpose.msk.msra.mxu3 %vm178_vm8, %v144_v7 }
 0x18f   :  { %1802 = vmatmul.msk.f32.vlgmr.msra.gmra.mxu3 %vm178_vm8, %v116_v8 }
 0x192   :  { %v172_v9 = vpop.f32.mrf.mxu2 }
 0x193   :  { %v147_v11 = vpop.f32.mrf.mxu1  ;;  %v119_v12 = vpop.f32.mrf.mxu0 }
 0x194   :  { %1803 = vmatpush.xpose.msk.msrb.mxu3 %vm178_vm8, %v147_v11 }
 0x197   :  { %1804 = vmatmul.msk.f32.vlgmr.msrb.gmra.mxu3 %vm178_vm8, %v119_v12 }
 0x198   :  { %306 = vmatpush.msra.mxu3 %v172_v9 }
 0x19a   :  { %v175_v13 = vpop.f32.mrf.mxu2 }
 0x19b   :  { %329 = vmatpush.msrb.mxu3 %v175_v13  ;;  %v361_v15 = vpop.f32.mrf.mxu1 }
 0x1a2   :  { %v389_v14 = vpop.f32.mrf.mxu2 }
 0x1a3   :  { %1829 = vmatpush.xpose.msk.msrb.mxu0 %vm178_vm8, %v389_v14  ;;  %v364_v17 = vpop.f32.mrf.mxu1 }
 0x1a6   :  { %1830 = vmatmul.msk.f32.vlgmr.msrb.gmra.mxu0 %vm178_vm8, %v361_v15 }
 0x1aa   :  { %v392_v16 = vpop.f32.mrf.mxu2 }
 0x1ab   :  { %1831 = vmatpush.xpose.msk.msra.mxu0 %vm178_vm8, %v392_v16  ;;  %v1826_v16 = vld [vmem:[%s2687_s1 + $0xd8] sm:$0xff] }
 0x1ae   :  { %1832 = vmatmul.msk.f32.vlgmr.msra.gmra.mxu0 %vm178_vm8, %v364_v17 }
 0x212   :  { %v202_v22 = vpop.f32.mrf.mxu3 }
 0x213   :  { %v231_v23 = vmul.f32 0.25, %v202_v22  ;;  %v1825_v22 = vld [vmem:[%s2687_s1 + $0xd0] sm:$0xff] }
 0x215   :  { %v237_v24 = vadd.f32 %v2237_v21, %v231_v23 }
 0x217   :  { %v240_v26 = vsel %vm239_vm9, %v237_v24, -inf }
 0x218   :  { %241 = vmax.xlane.f32.xlu2 %v240_v26 }
 0x21a   :  { %v228_v28 = vpop.f32.mrf.mxu3 }
 0x21b   :  { %v232_v29 = vmul.f32 0.25, %v228_v28 }
 0x21d   :  { %v238_v30 = vadd.f32 %v2241_v27, %v232_v29  ;;  %v1823_v29 = vld [vmem:[%s2687_s1 + $0xc0] sm:$0xff] }
 0x21f   :  { %v243_v31 = vsel %vm239_vm9, %v238_v30, -inf }
 0x220   :  { %244 = vmax.xlane.f32.xlu2 %v243_v31  ;;  %v1810_v31 = vld [vmem:[%s2687_s1 + $0x78] sm:$0xff] }
 0x221   :  { %1845 = vmatpush.xpose.msk.msrb.mxu0 %vm178_vm8, %v1810_v31  ;;  %v712_v31 = vld [vmem:[%s2688_s2] sm:$0xff] }
 0x223   :  { %v446_v32 = vpop.f32.mrf.mxu0 }
 0x224   :  { %v475_v33 = vmul.f32 0.25, %v446_v32  ;;  %v1809_v32 = vld [vmem:[%s2687_s1 + $0x70] sm:$0xff] }
 0x225   :  { %1846 = vmatpush.xpose.msk.msrb.mxu0 %vm178_vm8, %v1809_v32 }
 0x226   :  { %v477_v34 = vadd.f32 %v475_v33, %v2237_v21  ;;  %v1808_v33 = vld [vmem:[%s2687_s1 + $0x68] sm:$0xff] }
 0x228   :  { %v479_v35 = vsel %vm239_vm9, %v477_v34, -inf }
 0x229   :  { %480 = vmax.xlane.f32.xlu2 %v479_v35  ;;  %1847 = vmatpush.xpose.msk.msrb.mxu0 %vm178_vm8, %v1808_v33 }
 0x22b   :  { %v472_v40 = vpop.f32.mrf.mxu0 }
 0x22c   :  { %v476_v44 = vmul.f32 0.25, %v472_v40 }
 0x22e   :  { %v478_v46 = vadd.f32 %v476_v44, %v2241_v27 }
 0x230   :  { %v482_v51 = vsel %vm239_vm9, %v478_v46, -inf }
 0x28b   :  { %v242_v36 = vpop.xlane.xlu2 %241 }
 0x28c   :  { %v246_v37 = vsub.f32 %v237_v24, %v242_v36 }
 0x28e   :  { %v248_v38 = vmul.f32 1.442695, %v246_v37 }
 0x290   :  { %2000 = vpow2.f32 %v248_v38 }
 0x293   :  { %v245_v39 = vpop.xlane.xlu2 %244 }
 0x294   :  { %v247_v41 = vsub.f32 %v238_v30, %v245_v39 }
 0x296   :  { %v2001_v42 = vpop.eup %2000  ;;  %v250_v43 = vmul.f32 1.442695, %v247_v41 }
 0x297   :  { %v252_v45 = vsel %vm239_vm9, %v2001_v42, 0.0 }
 0x298   :  { %2002 = vpow2.f32 %v250_v43  ;;  %253 = vadd.xlane.f32.xlu0 %v252_v45 }
 0x29c   :  { %v481_v47 = vpop.xlane.xlu2 %480 }
 0x29d   :  { %v485_v48 = vsub.f32 %v477_v34, %v481_v47 }
 0x29e   :  { %v2003_v49 = vpop.eup %2002 }
 0x29f   :  { %v487_v50 = vmul.f32 1.442695, %v485_v48  ;;  %v255_v52 = vsel %vm239_vm9, %v2003_v49, 0.0 }
 0x2a0   :  { %483 = vmax.xlane.f32.xlu0 %v482_v51  ;;  %256 = vadd.xlane.f32.xlu1 %v255_v52 }
 0x2a1   :  { %2004 = vpow2.f32 %v487_v50 }
 0x2a7   :  { %v2251_v53 = vpop.eup %2004 }
 0x2a8   :  { %v491_v54 = vsel %vm239_vm9, %v2251_v53, 0.0 }
 0x2a9   :  { %492 = vadd.xlane.f32.xlu1 %v491_v54 }
 0x30b   :  { %v254_v55 = vpop.xlane.xlu0 %253 }
 0x30c   :  { %2006 = vrcp.f32 %v254_v55  ;;  %v269_v62 = vand.u32 2147483648, %v254_v55  ;;  %v267_v3 = vand.u32 2147483647, %v254_v55  ;;  %vm263_vm11 = vweird.f32 %v254_v55 }
 0x30e   :  { %v270_v8 = vor.u32 1.1754944e-38, %v269_v62  ;;  %vm268_vm13 = vcmp.eq.f32.partialorder %v267_v3, 8.507059e+37  ;;  %v1838_v62 = vld [vmem:[%s2687_s1 + $0xf8] sm:$0xff]  ;;  %v1835_v3 = vld [vmem:[%s2687_s1 + $0xe0] sm:$0xff] }
 0x312   :  { %v2007_v56 = vpop.eup %2006 }
 0x313   :  { %v259_v57 = vmul.f32 %v2007_v56, %v254_v55  ;;  %v257_v58 = vpop.xlane.xlu1 %256  ;;  %v484_v59 = vpop.xlane.xlu0 %483  ;;  %vm264_vm10 = vweird.f32 %v2007_v56 }
 0x314   :  { %2008 = vrcp.f32 %v257_v58  ;;  %v486_v61 = vsub.f32 %v478_v46, %v484_v59  ;;  %vm265_vm12 = vmor %vm263_vm11, %vm264_vm10  ;;  %v284_v14 = vand.u32 2147483648, %v257_v58  ;;  %v282_v19 = vand.u32 2147483647, %v257_v58 }
 0x315   :  { %v260_v60 = vsub.f32 1.0, %v259_v57  ;;  %vm278_vm15 = vweird.f32 %v257_v58 }
 0x316   :  { %v489_v4 = vmul.f32 1.442695, %v486_v61  ;;  %v285_v24 = vor.u32 1.1754944e-38, %v284_v14  ;;  %vm283_vm2 = vcmp.eq.f32.partialorder %v282_v19, 8.507059e+37 }
 0x317   :  { %v261_v1 = vmul.f32 %v2007_v56, %v260_v60 }
 0x318   :  { %2010 = vpow2.f32 %v489_v4 }
 0x319   :  { %v262_v5 = vadd.f32 %v2007_v56, %v261_v1  ;;  %v1836_v1 = vld [vmem:[%s2687_s1 + $0xe8] sm:$0xff] }
 0x31a   :  { %v2009_v7 = vpop.eup %2008 }
 0x31b   :  { %v266_v9 = vsel %vm265_vm12, %v2007_v56, %v262_v5  ;;  %v274_v11 = vmul.f32 %v2009_v7, %v257_v58  ;;  %vm279_vm14 = vweird.f32 %v2009_v7 }
 0x31c   :  { %v271_v12 = vsel %vm268_vm13, %v270_v8, %v266_v9  ;;  %vm280_vm1 = vmor %vm278_vm15, %vm279_vm14  ;;  %vm753_vm13 = vcmask 523264  }
 0x31d   :  { %v275_v13 = vsub.f32 1.0, %v274_v11  ;;  %v272_v15 = vmul.f32 %v2001_v42, %v271_v12 }
 0x31e   :  { %v2258_v17 = vpop.eup %2010 }
 0x31f   :  { %v276_v18 = vmul.f32 %v2009_v7, %v275_v13  ;;  %1805 = vmatmul.msk.f32.vlgmr.msra.gmra.mxu3 %vm239_vm9, %v272_v15  ;;  %v494_v20 = vsel %vm239_vm9, %v2258_v17, 0.0 }
 0x320   :  { %495 = vadd.xlane.f32.xlu2 %v494_v20  ;;  %412 = vmatpush.msra.mxu3 %v1826_v16 }
 0x321   :  { %v277_v23 = vadd.f32 %v2009_v7, %v276_v18 }
 0x322   :  { %413 = vmatpush.msra.mxu3 %v1825_v22 }
 0x323   :  { %v281_v26 = vsel %vm280_vm1, %v2009_v7, %v277_v23 }
 0x324   :  { %v286_v28 = vsel %vm283_vm2, %v285_v24, %v281_v26  ;;  %414 = vmatpush.msra.mxu3 %v1824_v25 }
 0x325   :  { %v287_v30 = vmul.f32 %v2003_v49, %v286_v28  ;;  %v715_v28 = vld [vmem:[%s2688_s2 + $0x18] sm:$0xff] }
 0x326   :  { %415 = vmatpush.msra.mxu3 %v1823_v29  ;;  %v714_v29 = vld [vmem:[%s2688_s2 + $0x10] sm:$0xff] }
 0x327   :  { %1806 = vmatmul.msk.f32.vlgmr.msrb.gmra.mxu3 %vm239_vm9, %v287_v30  ;;  %v713_v30 = vld [vmem:[%s2688_s2 + $0x8] sm:$0xff] }
 0x328   :  { %1839 = vmatpush.xpose.msk.msrb.mxu3 %vm178_vm8, %v1838_v62  ;;  %v1853_v62 = vld [vmem:[%s2688_s2 + $0x20] sm:$0xff] }
 0x32f   :  { %1827 = vmatmul.msk.f32.vlgmr.msra.gmra.mxu3 %vm31_vm0, %v2201_v63  ;;  %v1807_v63 = vld [vmem:[%s2687_s1 + $0x60] sm:$0xff] }
 0x330   :  { %1848 = vmatpush.xpose.msk.msrb.mxu0 %vm178_vm8, %v1807_v63 }
 0x337   :  { %1828 = vmatmul.msk.f32.gmra.mxu3 %vm31_vm0, %v2210_v6  ;;  %v493_v6 = vpop.xlane.xlu1 %492 }
 0x338   :  { %2012 = vrcp.f32 %v493_v6  ;;  %v508_v44 = vand.u32 2147483648, %v493_v6  ;;  %vm502_vm4 = vweird.f32 %v493_v6  ;;  %v506_v45 = vand.u32 2147483647, %v493_v6 }
 0x33a   :  { %v509_v49 = vor.u32 1.1754944e-38, %v508_v44  ;;  %vm507_vm6 = vcmp.eq.f32.partialorder %v506_v45, 8.507059e+37  ;;  %v1981_v45 = vld [vmem:[%s2689_s3 + $0x2] ss:$0 sm:$0xff] }
 0x33e   :  { %v2013_v35 = vpop.eup %2012 }
 0x33f   :  { %v498_v36 = vmul.f32 %v2013_v35, %v493_v6  ;;  %vm503_vm3 = vweird.f32 %v2013_v35 }
 0x340   :  { %vm504_vm5 = vmor %vm502_vm4, %vm503_vm3 }
 0x341   :  { %v499_v37 = vsub.f32 1.0, %v498_v36  ;;  %v1855_v36 = vld [vmem:[%s2688_s2 + $0x30] sm:$0xff] }
 0x343   :  { %v500_v40 = vmul.f32 %v2013_v35, %v499_v37 }
 0x345   :  { %v501_v42 = vadd.f32 %v2013_v35, %v500_v40 }
 0x347   :  { %v505_v47 = vsel %vm504_vm5, %v2013_v35, %v501_v42  ;;  %v1854_v42 = vld [vmem:[%s2688_s2 + $0x28] sm:$0xff] }
 0x348   :  { %v510_v50 = vsel %vm507_vm6, %v509_v49, %v505_v47 }
 0x349   :  { %v511_v56 = vmul.f32 %v2251_v53, %v510_v50  ;;  %v1837_v53 = vld [vmem:[%s2687_s1 + $0xf0] sm:$0xff] }
 0x34a   :  { %1840 = vmatpush.xpose.msk.msrb.mxu3 %vm178_vm8, %v1837_v53  ;;  %v1983_v53 = vld [vmem:[%s2689_s3 + $0x4] ss:$0 sm:$0xff] }
 0x34e   :  { %1841 = vmatpush.xpose.msk.msrb.mxu3 %vm178_vm8, %v1836_v1 }
 0x352   :  { %1842 = vmatpush.xpose.msk.msrb.mxu3 %vm178_vm8, %v1835_v3 }
 0x393   :  { %v496_v34 = vpop.xlane.xlu2 %495 }
 0x394   :  { %2014 = vrcp.f32 %v496_v34  ;;  %v523_v52 = vand.u32 2147483648, %v496_v34  ;;  %vm517_vm10 = vweird.f32 %v496_v34  ;;  %v521_v54 = vand.u32 2147483647, %v496_v34 }
 0x396   :  { %v524_v58 = vor.u32 1.1754944e-38, %v523_v52  ;;  %vm522_vm12 = vcmp.eq.f32.partialorder %v521_v54, 8.507059e+37 }
 0x39a   :  { %v2015_v38 = vpop.eup %2014 }
 0x39b   :  { %v513_v41 = vmul.f32 %v2015_v38, %v496_v34  ;;  %vm518_vm7 = vweird.f32 %v2015_v38  ;;  %v1856_v34 = vld [vmem:[%s2688_s2 + $0x38] sm:$0xff] }
 0x39c   :  { %vm519_vm11 = vmor %vm517_vm10, %vm518_vm7 }
 0x39d   :  { %v514_v43 = vsub.f32 1.0, %v513_v41 }
 0x39f   :  { %v515_v48 = vmul.f32 %v2015_v38, %v514_v43 }
 0x3a1   :  { %v516_v51 = vadd.f32 %v2015_v38, %v515_v48  ;;  %v1982_v48 = vld [vmem:[%s2689_s3 + $0x3] ss:$0 sm:$0xff] }
 0x3a2   :  { %v308_v39 = vpop.f32.mrf.mxu3 }
 0x3a3   :  { %1849 = vmatmul.msk.f32.vlgmr.msrb.gmra.mxu0 %vm178_vm8, %v308_v39  ;;  %v520_v57 = vsel %vm519_vm11, %v2015_v38, %v516_v51 }
 0x3a4   :  { %v525_v59 = vsel %vm522_vm12, %v524_v58, %v520_v57 }
 0x3a5   :  { %v526_v61 = vmul.f32 %v2258_v17, %v525_v59 }
 0x3aa   :  { %v331_v46 = vpop.f32.mrf.mxu3 }
 0x3ab   :  { %1850 = vmatmul.msk.f32.gmra.mxu0 %vm178_vm8, %v331_v46 }
 0x3b2   :  { %v417_v55 = vpop.f32.mrf.mxu3 }
 0x3b3   :  { %545 = vmatpush.msra.mxu1 %v417_v55 }
 0x3b4   :  { %1833 = vmatmul.msk.f32.vlgmr.msra.gmra.mxu1 %vm239_vm9, %v511_v56 }
 0x3b5   :  { %735 = vmatpush.msrb.mxu1 %v715_v28 }
 0x3b7   :  { %736 = vmatpush.msrb.mxu1 %v714_v29  ;;  %v1866_v29 = vld [vmem:[%s2687_s1 + $0x118] sm:$0xff] }
 0x3b8   :  { %879 = vmatpush.msra.mxu3 %v1866_v29 }
 0x3b9   :  { %737 = vmatpush.msrb.mxu1 %v713_v30  ;;  %v1872_v30 = vld [vmem:[%s2687_s1 + $0x138] sm:$0xff] }
 0x3ba   :  { %v420_v60 = vpop.f32.mrf.mxu3 }
 0x3bb   :  { %568 = vmatpush.msra.mxu2 %v420_v60  ;;  %738 = vmatpush.msrb.mxu1 %v712_v31  ;;  %v1878_v31 = vld [vmem:[%s2687_s1 + $0x158] sm:$0xff] }
 0x3bc   :  { %1834 = vmatmul.msk.f32.vlgmr.msra.gmra.mxu2 %vm239_vm9, %v526_v61  ;;  %935 = vmatpush.msra.mxu0 %v1878_v31 }
 0x3bd   :  { %1857 = vmatpush.xpose.msk.msrb.mxu2 %vm753_vm13, %v1856_v34  ;;  %907 = vmatpush.msra.mxu1 %v1872_v30  ;;  %v1870_v34 = vld [vmem:[%s2687_s1 + $0x128] sm:$0xff] }
 0x3c1   :  { %1858 = vmatpush.xpose.msk.msrb.mxu2 %vm753_vm13, %v1855_v36  ;;  %v1863_v36 = vld [vmem:[%s2687_s1 + $0x100] sm:$0xff] }
 0x3c5   :  { %1859 = vmatpush.xpose.msk.msrb.mxu2 %vm753_vm13, %v1854_v42 }
 0x3c9   :  { %1860 = vmatpush.xpose.msk.msrb.mxu2 %vm753_vm13, %v1853_v62 }
 0x420   :  { %v654_v7 = vpop.f32.mrf.mxu0 }
 0x428   :  { %v657_v13 = vpop.f32.mrf.mxu0 }
 0x431   :  { %v547_v4 = vpop.f32.mrf.mxu1 }
 0x432   :  { %1843 = vmatmul.msk.f32.vlgmr.msrb.gmra.mxu3 %vm178_vm8, %v547_v4 }
 0x43f   :  { %v570_v5 = vpop.f32.mrf.mxu2 }
 0x440   :  { %1844 = vmatmul.msk.f32.gmra.mxu3 %vm178_vm8, %v570_v5 }
 0x4b5   :  { %v613_v8 = vpop.f32.mrf.mxu3 }
 0x4b6   :  { %v655_v9 = vadd.f32 %v654_v7, %v613_v8 }
 0x4b8   :  { %v2318_v11 = vadd.f32 %v655_v9, %v2105_v0  ;;  %v1984_v9 = vld [vmem:[%s2689_s3 + $0x5] ss:$0 sm:$0xff] }
 0x4ba   :  { %v662_v12 = vsel %vm31_vm0, %v2318_v11, 0.0 }
 0x4bb   :  { %663 = vadd.xlane.f32.xlu0 %v662_v12 }
 0x4c3   :  { %v616_v14 = vpop.f32.mrf.mxu3 }
 0x4c4   :  { %v658_v15 = vadd.f32 %v657_v13, %v616_v14 }
 0x4c6   :  { %v2323_v16 = vadd.f32 %v658_v15, %v2112_v2 }
 0x4c8   :  { %v665_v17 = vsel %vm31_vm0, %v2323_v16, 0.0 }
 0x4c9   :  { %666 = vadd.xlane.f32.xlu1 %v665_v17 }
 0x52e   :  { %v664_v18 = vpop.xlane.xlu0 %663 }
 0x52f   :  { %v668_v19 = vmul.f32 %v664_v18, %v2116_v10 }
 0x531   :  { %v670_v0 = vsub.f32 %v2318_v11, %v668_v19 }
 0x533   :  { %v672_v20 = vmul.f32 %v670_v0, %v670_v0 }
 0x535   :  { %v674_v22 = vsel %vm31_vm0, %v672_v20, 0.0 }
 0x536   :  { %675 = vadd.xlane.f32.xlu2 %v674_v22 }
 0x53c   :  { %v667_v23 = vpop.xlane.xlu1 %666 }
 0x53d   :  { %v669_v24 = vmul.f32 %v667_v23, %v2116_v10 }
 0x53f   :  { %v671_v25 = vsub.f32 %v2323_v16, %v669_v24 }
 0x541   :  { %v673_v2 = vmul.f32 %v671_v25, %v671_v25 }
 0x543   :  { %v677_v26 = vsel %vm31_vm0, %v673_v2, 0.0 }
 0x544   :  { %678 = vadd.xlane.f32.xlu0 %v677_v26 }
 0x5a9   :  { %v676_v32 = vpop.xlane.xlu2 %675 }
 0x5aa   :  { %v680_v33 = vmul.f32 %v676_v32, %v2116_v10  ;;  %v1865_v32 = vld [vmem:[%s2687_s1 + $0x110] sm:$0xff] }
 0x5ab   :  { %880 = vmatpush.msra.mxu3 %v1865_v32 }
 0x5ac   :  { %v682_v63 = vadd.f32 1e-06, %v680_v33  ;;  %v1871_v33 = vld [vmem:[%s2687_s1 + $0x130] sm:$0xff] }
 0x5ad   :  { %908 = vmatpush.msra.mxu1 %v1871_v33 }
 0x5ae   :  { %2016 = vrsqrt.f32 %v682_v63  ;;  %vm690_vm15 = vweird.f32 %v682_v63 }
 0x5af   :  { %909 = vmatpush.msra.mxu1 %v1870_v34 }
 0x5b4   :  { %v2017_v6 = vpop.eup %2016 }
 0x5b5   :  { %v685_v35 = vmul.f32 %v2017_v6, %v682_v63  ;;  %vm691_vm14 = vweird.f32 %v2017_v6  ;;  %v1877_v63 = vld [vmem:[%s2687_s1 + $0x150] sm:$0xff] }
 0x5b6   :  { %vm692_vm1 = vmor %vm690_vm15, %vm691_vm14  ;;  %936 = vmatpush.msra.mxu0 %v1877_v63 }
 0x5b7   :  { %v686_v37 = vmul.f32 %v2017_v6, %v685_v35  ;;  %v679_v38 = vpop.xlane.xlu0 %678  ;;  %v1876_v35 = vld [vmem:[%s2687_s1 + $0x148] sm:$0xff] }
 0x5b8   :  { %v681_v39 = vmul.f32 %v679_v38, %v2116_v10  ;;  %937 = vmatpush.msra.mxu0 %v1876_v35  ;;  %v1875_v38 = vld [vmem:[%s2687_s1 + $0x140] sm:$0xff] }
 0x5b9   :  { %v687_v40 = vmul.f32 0.5, %v686_v37  ;;  %v1869_v37 = vld [vmem:[%s2687_s1 + $0x120] sm:$0xff] }
 0x5ba   :  { %v683_v41 = vadd.f32 1e-06, %v681_v39  ;;  %910 = vmatpush.msra.mxu1 %v1869_v37  ;;  %938 = vmatpush.msra.mxu0 %v1875_v38 }
 0x5bb   :  { %v688_v43 = vsub.f32 1.5, %v687_v40 }
 0x5bc   :  { %2018 = vrsqrt.f32 %v683_v41  ;;  %vm700_vm3 = vweird.f32 %v683_v41 }
 0x5bd   :  { %v689_v44 = vmul.f32 %v2017_v6, %v688_v43 }
 0x5bf   :  { %v693_v46 = vsel %vm692_vm1, %v2017_v6, %v689_v44  ;;  %v1864_v6 = vld [vmem:[%s2687_s1 + $0x108] sm:$0xff]  ;;  %v1900_v44 = vld [vmem:[%s2687_s1 + $0x1b8] sm:$0xff] }
 0x5c0   :  { %v704_v47 = vmul.f32 %v693_v46, %v670_v0  ;;  %881 = vmatpush.msra.mxu3 %v1864_v6  ;;  %1146 = vmatpush.msrb.mxu0 %v1900_v44  ;;  %v1903_v44 = vld [vmem:[%s2687_s1 + $0x1c0] sm:$0xff] }
 0x5c2   :  { %v2019_v49 = vpop.eup %2018  ;;  %v707_v50 = vmul.f32 %v1981_v45, %v704_v47  ;;  %882 = vmatpush.msra.mxu3 %v1863_v36 }
 0x5c3   :  { %v695_v51 = vmul.f32 %v2019_v49, %v683_v41  ;;  %vm701_vm2 = vweird.f32 %v2019_v49 }
 0x5c4   :  { %v710_v52 = vadd.f32 %v1982_v48, %v707_v50  ;;  %vm702_vm4 = vmor %vm700_vm3, %vm701_vm2 }
 0x5c5   :  { %v696_v54 = vmul.f32 %v2019_v49, %v695_v51  ;;  %v1897_v51 = vld [vmem:[%s2687_s1 + $0x1a0] sm:$0xff] }
 0x5c6   :  { %1851 = vmatmul.msk.f32.vlgmr.msrb.gmra.mxu1 %vm31_vm0, %v710_v52 }
 0x5c7   :  { %v697_v55 = vmul.f32 0.5, %v696_v54 }
 0x5c9   :  { %v698_v56 = vsub.f32 1.5, %v697_v55 }
 0x5cb   :  { %v699_v57 = vmul.f32 %v2019_v49, %v698_v56  ;;  %v1985_v56 = vld [vmem:[%s2689_s3 + $0x6] ss:$0 sm:$0xff] }
 0x5cd   :  { %v703_v58 = vsel %vm702_vm4, %v2019_v49, %v699_v57 }
 0x5ce   :  { %v705_v59 = vmul.f32 %v703_v58, %v671_v25  ;;  %v1986_v58 = vld [vmem:[%s2689_s3 + $0x7] ss:$0 sm:$0xff] }
 0x5d0   :  { %v708_v60 = vmul.f32 %v1981_v45, %v705_v59  ;;  %v1899_v45 = vld [vmem:[%s2687_s1 + $0x1b0] sm:$0xff] }
 0x5d1   :  { %1147 = vmatpush.msrb.mxu0 %v1899_v45 }
 0x5d2   :  { %v711_v61 = vadd.f32 %v1982_v48, %v708_v60  ;;  %v1898_v48 = vld [vmem:[%s2687_s1 + $0x1a8] sm:$0xff] }
 0x5d3   :  { %1148 = vmatpush.msrb.mxu0 %v1898_v48 }
 0x5d4   :  { %1852 = vmatmul.msk.f32.gmra.mxu1 %vm31_vm0, %v711_v61 }
 0x5d5   :  { %1149 = vmatpush.msrb.mxu0 %v1897_v51 }
 0x643   :  { %v740_v1 = vpop.f32.mrf.mxu1 }
 0x644   :  { %v741_v3 = vadd.f32 %v1983_v53, %v740_v1 }
 0x646   :  { %v746_v4 = vmax.f32 %v741_v3, 0.0 }
 0x648   :  { %1861 = vmatmul.msk.f32.vlgmr.msrb.gmra.mxu2 %vm753_vm13, %v746_v4 }
 0x651   :  { %v743_v5 = vpop.f32.mrf.mxu1 }
 0x652   :  { %v744_v7 = vadd.f32 %v1983_v53, %v743_v5 }
 0x654   :  { %v747_v8 = vmax.f32 %v744_v7, 0.0 }
 0x656   :  { %1862 = vmatmul.msk.f32.gmra.mxu2 %vm753_vm13, %v747_v8 }
 0x6cb   :  { %v789_v12 = vpop.f32.mrf.mxu2 }
 0x6cc   :  { %v795_v13 = vadd.f32 %v789_v12, %v2318_v11 }
 0x6ce   :  { %v2380_v14 = vadd.f32 %v1984_v9, %v795_v13 }
 0x6d0   :  { %v806_v15 = vsel %vm31_vm0, %v2380_v14, 0.0 }
 0x6d1   :  { %807 = vadd.xlane.f32.xlu1 %v806_v15 }
 0x6d9   :  { %v792_v17 = vpop.f32.mrf.mxu2 }
 0x6da   :  { %v796_v18 = vadd.f32 %v792_v17, %v2323_v16 }
 0x6dc   :  { %v2385_v19 = vadd.f32 %v1984_v9, %v796_v18  ;;  %v1894_v18 = vld [vmem:[%s2687_s1 + $0x198] sm:$0xff] }
 0x6de   :  { %v809_v0 = vsel %vm31_vm0, %v2385_v19, 0.0 }
 0x6df   :  { %810 = vadd.xlane.f32.xlu2 %v809_v0 }
 0x744   :  { %v808_v20 = vpop.xlane.xlu1 %807 }
 0x745   :  { %v812_v22 = vmul.f32 %v808_v20, %v2116_v10 }
 0x747   :  { %v814_v11 = vsub.f32 %v2380_v14, %v812_v22  ;;  %v1893_v22 = vld [vmem:[%s2687_s1 + $0x190] sm:$0xff] }
 0x749   :  { %v816_v23 = vmul.f32 %v814_v11, %v814_v11 }
 0x74b   :  { %v818_v24 = vsel %vm31_vm0, %v816_v23, 0.0  ;;  %v1891_v23 = vld [vmem:[%s2687_s1 + $0x180] sm:$0xff] }
 0x74c   :  { %819 = vadd.xlane.f32.xlu0 %v818_v24 }
 0x752   :  { %v811_v25 = vpop.xlane.xlu2 %810 }
 0x753   :  { %v813_v2 = vmul.f32 %v811_v25, %v2116_v10 }
 0x755   :  { %v2394_v16 = vsub.f32 %v2385_v19, %v813_v2 }
 0x757   :  { %v817_v26 = vmul.f32 %v2394_v16, %v2394_v16 }
 0x759   :  { %v821_v28 = vsel %vm31_vm0, %v817_v26, 0.0 }
 0x75a   :  { %822 = vadd.xlane.f32.xlu1 %v821_v28 }
 0x7bf   :  { %v820_v39 = vpop.xlane.xlu0 %819 }
 0x7c0   :  { %v824_v40 = vmul.f32 %v820_v39, %v2116_v10 }
 0x7c2   :  { %v826_v41 = vadd.f32 1e-06, %v824_v40 }
 0x7c4   :  { %2020 = vrsqrt.f32 %v826_v41  ;;  %vm834_vm6 = vweird.f32 %v826_v41 }
 0x7ca   :  { %v2021_v42 = vpop.eup %2020 }
 0x7cb   :  { %v829_v43 = vmul.f32 %v2021_v42, %v826_v41  ;;  %vm835_vm5 = vweird.f32 %v2021_v42  ;;  %v1906_v41 = vld [vmem:[%s2687_s1 + $0x1d8] sm:$0xff] }
 0x7cc   :  { %vm836_vm7 = vmor %vm834_vm6, %vm835_vm5 }
 0x7cd   :  { %v830_v46 = vmul.f32 %v2021_v42, %v829_v43  ;;  %v823_v47 = vpop.xlane.xlu1 %822  ;;  %v1904_v43 = vld [vmem:[%s2687_s1 + $0x1c8] sm:$0xff] }
 0x7ce   :  { %v825_v49 = vmul.f32 %v823_v47, %v2116_v10 }
 0x7cf   :  { %v831_v50 = vmul.f32 0.5, %v830_v46 }
 0x7d0   :  { %v827_v52 = vadd.f32 1e-06, %v825_v49 }
 0x7d1   :  { %v832_v54 = vsub.f32 1.5, %v831_v50 }
 0x7d2   :  { %2022 = vrsqrt.f32 %v827_v52  ;;  %vm844_vm11 = vweird.f32 %v827_v52 }
 0x7d3   :  { %v833_v55 = vmul.f32 %v2021_v42, %v832_v54 }
 0x7d5   :  { %v837_v57 = vsel %vm836_vm7, %v2021_v42, %v833_v55  ;;  %v1905_v42 = vld [vmem:[%s2687_s1 + $0x1d0] sm:$0xff] }
 0x7d6   :  { %v848_v59 = vmul.f32 %v837_v57, %v814_v11  ;;  %v1892_v11 = vld [vmem:[%s2687_s1 + $0x188] sm:$0xff] }
 0x7d8   :  { %v2023_v60 = vpop.eup %2022  ;;  %v851_v61 = vmul.f32 %v1985_v56, %v848_v59 }
 0x7d9   :  { %v839_v62 = vmul.f32 %v2023_v60, %v827_v52  ;;  %vm845_vm10 = vweird.f32 %v2023_v60 }
 0x7da   :  { %v2455_v53 = vadd.f32 %v1986_v58, %v851_v61  ;;  %vm846_vm12 = vmor %vm844_vm11, %vm845_vm10 }
 0x7db   :  { %v840_v1 = vmul.f32 %v2023_v60, %v839_v62 }
 0x7dc   :  { %1867 = vmatmul.msk.f32.vlgmr.msra.gmra.mxu3 %vm31_vm0, %v2455_v53  ;;  %1873 = vmatmul.msk.f32.vlgmr.msra.gmra.mxu1 %vm31_vm0, %v2455_v53 }
 0x7dd   :  { %v841_v3 = vmul.f32 0.5, %v840_v1  ;;  %1879 = vmatmul.msk.f32.vlgmr.msra.gmra.mxu0 %vm31_vm0, %v2455_v53 }
 0x7df   :  { %v842_v4 = vsub.f32 1.5, %v841_v3 }
 0x7e1   :  { %v843_v5 = vmul.f32 %v2023_v60, %v842_v4 }
 0x7e3   :  { %v847_v7 = vsel %vm846_vm12, %v2023_v60, %v843_v5 }
 0x7e4   :  { %v849_v8 = vmul.f32 %v847_v7, %v2394_v16 }
 0x7e6   :  { %v852_v9 = vmul.f32 %v1985_v56, %v849_v8 }
 0x7e8   :  { %v2464_v12 = vadd.f32 %v1986_v58, %v852_v9 }
 0x7ea   :  { %1868 = vmatmul.msk.f32.gmra.mxu3 %vm31_vm0, %v2464_v12  ;;  %1874 = vmatmul.msk.f32.gmra.mxu1 %vm31_vm0, %v2464_v12 }
 0x7eb   :  { %1880 = vmatmul.msk.f32.gmra.mxu0 %vm31_vm0, %v2464_v12 }
 0x7f3   :  { %1901 = vmatmul.msk.f32.vlgmr.msrb.gmra.mxu0 %vm31_vm0, %v2455_v53 }
 0x7fb   :  { %1902 = vmatmul.msk.f32.gmra.mxu0 %vm31_vm0, %v2464_v12 }
 0x859   :  { %v912_v13 = vpop.f32.mrf.mxu1 }
 0x85a   :  { %v940_v15 = vpop.f32.mrf.mxu0  ;;  %1881 = vmatpush.xpose.msk.msra.mxu2 %vm178_vm8, %v912_v13 }
 0x85b   :  { %1068 = vmatpush.msrb.mxu1 %v940_v15 }
 0x85d   :  { %1174 = vmatpush.msra.mxu1 %v1906_v41  ;;  %v1915_v41 = vld [vmem:[%s2687_s1 + $0x1e0] sm:$0xff] }
 0x85f   :  { %v884_v17 = vpop.f32.mrf.mxu3  ;;  %1175 = vmatpush.msra.mxu1 %v1905_v42 }
 0x860   :  { %1882 = vmatmul.msk.f32.vlgmr.msra.gmra.mxu2 %vm178_vm8, %v884_v17  ;;  %v1890_v17 = vld [vmem:[%s2687_s1 + $0x178] sm:$0xff] }
 0x861   :  { %1176 = vmatpush.msra.mxu1 %v1904_v43 }
 0x863   :  { %1177 = vmatpush.msra.mxu1 %v1903_v44 }
 0x867   :  { %v915_v0 = vpop.f32.mrf.mxu1 }
 0x868   :  { %v943_v20 = vpop.f32.mrf.mxu0  ;;  %1883 = vmatpush.xpose.msk.msrb.mxu3 %vm178_vm8, %v915_v0  ;;  %v1887_v0 = vld [vmem:[%s2687_s1 + $0x160] sm:$0xff] }
 0x869   :  { %1091 = vmatpush.msrb.mxu2 %v943_v20 }
 0x86c   :  { %1118 = vmatpush.msra.mxu3 %v1894_v18  ;;  %v1888_v18 = vld [vmem:[%s2687_s1 + $0x168] sm:$0xff] }
 0x86d   :  { %v887_v24 = vpop.f32.mrf.mxu3 }
 0x86e   :  { %1119 = vmatpush.msra.mxu3 %v1893_v22 }
 0x86f   :  { %1884 = vmatmul.msk.f32.vlgmr.msrb.gmra.mxu3 %vm178_vm8, %v887_v24 }
 0x870   :  { %1120 = vmatpush.msra.mxu3 %v1892_v11  ;;  %v1151_v25 = vpop.f32.mrf.mxu0 }
 0x871   :  { %1909 = vmatpush.xpose.msk.msra.mxu2 %vm178_vm8, %v1151_v25 }
 0x872   :  { %1121 = vmatpush.msra.mxu3 %v1891_v23 }
 0x877   :  { %1895 = vmatmul.msk.f32.vlgmr.msra.gmra.mxu3 %vm31_vm0, %v2455_v53 }
 0x878   :  { %v1154_v13 = vpop.f32.mrf.mxu0 }
 0x87f   :  { %1896 = vmatmul.msk.f32.gmra.mxu3 %vm31_vm0, %v2464_v12 }
 0x8e3   :  { %v969_v2 = vpop.f32.mrf.mxu2 }
 0x8e4   :  { %v998_v16 = vmul.f32 0.25, %v969_v2 }
 0x8e6   :  { %v1000_v26 = vadd.f32 %v998_v16, %v2237_v21 }
 0x8e8   :  { %v1002_v28 = vsel %vm239_vm9, %v1000_v26, -inf }
 0x8e9   :  { %1003 = vmax.xlane.f32.xlu1 %v1002_v28 }
 0x8f2   :  { %v995_v29 = vpop.f32.mrf.mxu3 }
 0x8f3   :  { %v999_v30 = vmul.f32 0.25, %v995_v29 }
 0x8f5   :  { %v1001_v31 = vadd.f32 %v999_v30, %v2241_v27 }
 0x8f7   :  { %v1005_v32 = vsel %vm239_vm9, %v1001_v31, -inf }
 0x8f8   :  { %1006 = vmax.xlane.f32.xlu2 %v1005_v32 }
 0x8fa   :  { %v1123_v15 = vpop.f32.mrf.mxu3 }
 0x95c   :  { %v1004_v33 = vpop.xlane.xlu1 %1003 }
 0x95d   :  { %v1008_v63 = vsub.f32 %v1000_v26, %v1004_v33 }
 0x95f   :  { %v1010_v6 = vmul.f32 1.442695, %v1008_v63 }
 0x961   :  { %2024 = vpow2.f32 %v1010_v6 }
 0x967   :  { %v2025_v34 = vpop.eup %2024 }
 0x968   :  { %v1014_v35 = vsel %vm239_vm9, %v2025_v34, 0.0 }
 0x969   :  { %1015 = vadd.xlane.f32.xlu2 %v1014_v35 }
 0x96b   :  { %v1007_v36 = vpop.xlane.xlu2 %1006 }
 0x96c   :  { %v1009_v37 = vsub.f32 %v1001_v31, %v1007_v36 }
 0x96e   :  { %v1012_v38 = vmul.f32 1.442695, %v1009_v37 }
 0x970   :  { %2026 = vpow2.f32 %v1012_v38  ;;  %v1917_v38 = vld [vmem:[%s2687_s1 + $0x1f0] sm:$0xff] }
 0x976   :  { %v2027_v39 = vpop.eup %2026 }
 0x977   :  { %v1017_v40 = vsel %vm239_vm9, %v2027_v39, 0.0 }
 0x978   :  { %1018 = vadd.xlane.f32.xlu0 %v1017_v40  ;;  %v1916_v40 = vld [vmem:[%s2687_s1 + $0x1e8] sm:$0xff] }
 0x9dc   :  { %v1016_v45 = vpop.xlane.xlu2 %1015 }
 0x9dd   :  { %2028 = vrcp.f32 %v1016_v45  ;;  %v1031_v49 = vand.u32 2147483648, %v1016_v45  ;;  %v1029_v51 = vand.u32 2147483647, %v1016_v45  ;;  %vm1025_vm15 = vweird.f32 %v1016_v45 }
 0x9df   :  { %v1032_v55 = vor.u32 1.1754944e-38, %v1031_v49  ;;  %vm1030_vm2 = vcmp.eq.f32.partialorder %v1029_v51, 8.507059e+37 }
 0x9e3   :  { %v2029_v46 = vpop.eup %2028 }
 0x9e4   :  { %v1021_v47 = vmul.f32 %v2029_v46, %v1016_v45  ;;  %vm1026_vm14 = vweird.f32 %v2029_v46 }
 0x9e5   :  { %vm1027_vm1 = vmor %vm1025_vm15, %vm1026_vm14 }
 0x9e6   :  { %v1022_v48 = vsub.f32 1.0, %v1021_v47 }
 0x9e8   :  { %v1023_v50 = vmul.f32 %v2029_v46, %v1022_v48 }
 0x9ea   :  { %v1024_v52 = vadd.f32 %v2029_v46, %v1023_v50 }
 0x9eb   :  { %v1019_v54 = vpop.xlane.xlu0 %1018 }
 0x9ec   :  { %2030 = vrcp.f32 %v1019_v54  ;;  %v1028_v56 = vsel %vm1027_vm1, %v2029_v46, %v1024_v52  ;;  %v1046_v62 = vand.u32 2147483648, %v1019_v54  ;;  %v1044_v3 = vand.u32 2147483647, %v1019_v54 }
 0x9ed   :  { %v1033_v57 = vsel %vm1030_vm2, %v1032_v55, %v1028_v56  ;;  %vm1040_vm4 = vweird.f32 %v1019_v54 }
 0x9ee   :  { %v1034_v58 = vmul.f32 %v2025_v34, %v1033_v57  ;;  %v1047_v5 = vor.u32 1.1754944e-38, %v1046_v62  ;;  %vm1045_vm6 = vcmp.eq.f32.partialorder %v1044_v3, 8.507059e+37 }
 0x9f0   :  { %1885 = vmatmul.msk.f32.vlgmr.msrb.gmra.mxu1 %vm239_vm9, %v1034_v58 }
 0x9f2   :  { %v2031_v59 = vpop.eup %2030 }
 0x9f3   :  { %v1036_v60 = vmul.f32 %v2031_v59, %v1019_v54  ;;  %vm1041_vm3 = vweird.f32 %v2031_v59 }
 0x9f4   :  { %vm1042_vm5 = vmor %vm1040_vm4, %vm1041_vm3 }
 0x9f5   :  { %v1037_v61 = vsub.f32 1.0, %v1036_v60 }
 0x9f7   :  { %v1038_v1 = vmul.f32 %v2031_v59, %v1037_v61 }
 0x9f8   :  { %1907 = vmatmul.msk.f32.vlgmr.msra.gmra.mxu1 %vm31_vm0, %v2455_v53  ;;  %v1889_v53 = vld [vmem:[%s2687_s1 + $0x170] sm:$0xff] }
 0x9f9   :  { %v1039_v4 = vadd.f32 %v2031_v59, %v1038_v1 }
 0x9fb   :  { %v1043_v7 = vsel %vm1042_vm5, %v2031_v59, %v1039_v4 }
 0x9fc   :  { %v1048_v8 = vsel %vm1045_vm6, %v1047_v5, %v1043_v7 }
 0x9fd   :  { %v1049_v9 = vmul.f32 %v2027_v39, %v1048_v8 }
 0x9ff   :  { %1886 = vmatmul.msk.f32.vlgmr.msrb.gmra.mxu2 %vm239_vm9, %v1049_v9 }
 0xa00   :  { %1911 = vmatpush.xpose.msk.msrb.mxu2 %vm178_vm8, %v1154_v13  ;;  %1908 = vmatmul.msk.f32.gmra.mxu1 %vm31_vm0, %v2464_v12  ;;  %v1126_v12 = vpop.f32.mrf.mxu3 }
 0xa07   :  { %1910 = vmatmul.msk.f32.vlgmr.msra.gmra.mxu2 %vm178_vm8, %v1123_v15 }
 0xa08   :  { %1925 = vmatpush.xpose.msk.msra.mxu2 %vm178_vm8, %v1890_v17 }
 0xa0c   :  { %1926 = vmatpush.xpose.msk.msra.mxu2 %vm178_vm8, %v1889_v53 }
 0xa0f   :  { %1912 = vmatmul.msk.f32.vlgmr.msrb.gmra.mxu2 %vm178_vm8, %v1126_v12 }
 0xa10   :  { %1927 = vmatpush.xpose.msk.msra.mxu2 %vm178_vm8, %v1888_v18 }
 0xa14   :  { %1928 = vmatpush.xpose.msk.msra.mxu2 %vm178_vm8, %v1887_v0 }
 0xa6d   :  { %v1070_v20 = vpop.f32.mrf.mxu1 }
 0xa6e   :  { %1929 = vmatmul.msk.f32.vlgmr.msra.gmra.mxu2 %vm178_vm8, %v1070_v20 }
 0xa75   :  { %v1179_v22 = vpop.f32.mrf.mxu1 }
 0xa76   :  { %1307 = vmatpush.msrb.mxu3 %v1179_v22 }
 0xa7d   :  { %v1182_v11 = vpop.f32.mrf.mxu1 }
 0xa7e   :  { %1330 = vmatpush.msra.mxu0 %v1182_v11 }
 0xa82   :  { %v1093_v23 = vpop.f32.mrf.mxu2 }
 0xa83   :  { %1930 = vmatmul.msk.f32.gmra.mxu2 %vm178_vm8, %v1093_v23 }
 0xa8a   :  { %v1208_v24 = vpop.f32.mrf.mxu2 }
 0xa8b   :  { %v1237_v25 = vmul.f32 0.25, %v1208_v24 }
 0xa8d   :  { %v1239_v2 = vadd.f32 %v1237_v25, %v2237_v21 }
 0xa8f   :  { %v1241_v16 = vsel %vm239_vm9, %v1239_v2, -inf }
 0xa90   :  { %1242 = vmax.xlane.f32.xlu0 %v1241_v16 }
 0xa92   :  { %v1234_v26 = vpop.f32.mrf.mxu2 }
 0xa93   :  { %v1238_v28 = vmul.f32 0.25, %v1234_v26 }
 0xa95   :  { %v1240_v29 = vadd.f32 %v1238_v28, %v2241_v27  ;;  %v1918_v27 = vld [vmem:[%s2687_s1 + $0x1f8] sm:$0xff] }
 0xa96   :  { %1919 = vmatpush.xpose.msk.msrb.mxu1 %vm178_vm8, %v1918_v27  ;;  %v1934_v28 = vld [vmem:[%s2688_s2 + $0x58] sm:$0xff]  ;;  %v1938_v27 = vld [vmem:[%s2688_s2 + $0x68] sm:$0xff] }
 0xa97   :  { %v1244_v30 = vsel %vm239_vm9, %v1240_v29, -inf  ;;  %1498 = vmatpush.msra.mxu3 %v1934_v28  ;;  %v1565_v28 = vld [vmem:[%s2689_s3 + $0x18] sm:$0xff] }
 0xa98   :  { %1245 = vmax.xlane.f32.xlu1 %v1244_v30  ;;  %v1932_v30 = vld [vmem:[%s2688_s2 + $0x48] sm:$0xff] }
 0xa9a   :  { %1920 = vmatpush.xpose.msk.msrb.mxu1 %vm178_vm8, %v1917_v38 }
 0xa9e   :  { %1921 = vmatpush.xpose.msk.msrb.mxu1 %vm178_vm8, %v1916_v40 }
 0xaa2   :  { %1922 = vmatpush.xpose.msk.msrb.mxu1 %vm178_vm8, %v1915_v41 }
 0xaf1   :  { %v1416_v8 = vpop.f32.mrf.mxu2 }
 0xb03   :  { %v1243_v31 = vpop.xlane.xlu0 %1242 }
 0xb04   :  { %v1247_v32 = vsub.f32 %v1239_v2, %v1243_v31  ;;  %v1931_v31 = vld [vmem:[%s2688_s2 + $0x40] sm:$0xff] }
 0xb06   :  { %v1249_v33 = vmul.f32 1.442695, %v1247_v32  ;;  %v1419_v53 = vpop.f32.mrf.mxu2 }
 0xb08   :  { %2032 = vpow2.f32 %v1249_v33 }
 0xb0b   :  { %v1246_v63 = vpop.xlane.xlu1 %1245 }
 0xb0c   :  { %v1248_v6 = vsub.f32 %v1240_v29, %v1246_v63  ;;  %v1933_v29 = vld [vmem:[%s2688_s2 + $0x50] sm:$0xff] }
 0xb0d   :  { %1499 = vmatpush.msra.mxu3 %v1933_v29 }
 0xb0e   :  { %v2033_v34 = vpop.eup %2032  ;;  %v1251_v35 = vmul.f32 1.442695, %v1248_v6  ;;  %v1940_v6 = vld [vmem:[%s2688_s2 + $0x78] sm:$0xff] }
 0xb0f   :  { %v1253_v21 = vsel %vm239_vm9, %v2033_v34, 0.0  ;;  %1500 = vmatpush.msra.mxu3 %v1932_v30  ;;  %1941 = vmatpush.xpose.msk.msrb.mxu0 %vm753_vm13, %v1940_v6 }
 0xb10   :  { %2034 = vpow2.f32 %v1251_v35  ;;  %1254 = vadd.xlane.f32.xlu2 %v1253_v21 }
 0xb11   :  { %1501 = vmatpush.msra.mxu3 %v1931_v31 }
 0xb16   :  { %v2035_v36 = vpop.eup %2034 }
 0xb17   :  { %v1256_v37 = vsel %vm239_vm9, %v2035_v36, 0.0 }
 0xb18   :  { %1257 = vadd.xlane.f32.xlu0 %v1256_v37 }
 0xb83   :  { %v1255_v39 = vpop.xlane.xlu2 %1254 }
 0xb84   :  { %2036 = vrcp.f32 %v1255_v39  ;;  %v1270_v46 = vand.u32 2147483648, %v1255_v39  ;;  %v1268_v48 = vand.u32 2147483647, %v1255_v39  ;;  %vm1264_vm10 = vweird.f32 %v1255_v39 }
 0xb86   :  { %v1271_v51 = vor.u32 1.1754944e-38, %v1270_v46  ;;  %vm1269_vm12 = vcmp.eq.f32.partialorder %v1268_v48, 8.507059e+37 }
 0xb8a   :  { %v2037_v42 = vpop.eup %2036 }
 0xb8b   :  { %v1260_v43 = vmul.f32 %v2037_v42, %v1255_v39  ;;  %v1258_v44 = vpop.xlane.xlu0 %1257  ;;  %vm1265_vm7 = vweird.f32 %v2037_v42 }
 0xb8c   :  { %2038 = vrcp.f32 %v1258_v44  ;;  %vm1266_vm11 = vmor %vm1264_vm10, %vm1265_vm7  ;;  %v1285_v58 = vand.u32 2147483648, %v1258_v44  ;;  %v1283_v60 = vand.u32 2147483647, %v1258_v44  ;;  %vm1279_vm15 = vweird.f32 %v1258_v44 }
 0xb8d   :  { %v1261_v45 = vsub.f32 1.0, %v1260_v43 }
 0xb8e   :  { %v1286_v62 = vor.u32 1.1754944e-38, %v1285_v58  ;;  %vm1284_vm2 = vcmp.eq.f32.partialorder %v1283_v60, 8.507059e+37  ;;  %v1937_v60 = vld [vmem:[%s2688_s2 + $0x60] sm:$0xff] }
 0xb8f   :  { %v1262_v47 = vmul.f32 %v2037_v42, %v1261_v45  ;;  %v1987_v45 = vld [vmem:[%s2689_s3 + $0x8] ss:$0 sm:$0xff] }
 0xb91   :  { %v1263_v49 = vadd.f32 %v2037_v42, %v1262_v47 }
 0xb92   :  { %v2039_v50 = vpop.eup %2038 }
 0xb93   :  { %v1267_v52 = vsel %vm1266_vm11, %v2037_v42, %v1263_v49  ;;  %v1275_v54 = vmul.f32 %v2039_v50, %v1258_v44  ;;  %vm1280_vm14 = vweird.f32 %v2039_v50  ;;  %v1988_v49 = vld [vmem:[%s2689_s3 + $0x9] ss:$0 sm:$0xff] }
 0xb94   :  { %v1272_v55 = vsel %vm1269_vm12, %v1271_v51, %v1267_v52  ;;  %vm1281_vm1 = vmor %vm1279_vm15, %vm1280_vm14  ;;  %vm1657_vm15 = vcmask 80896  }
 0xb95   :  { %v1276_v56 = vsub.f32 1.0, %v1275_v54  ;;  %v1273_v57 = vmul.f32 %v2033_v34, %v1272_v55  ;;  %v1939_v34 = vld [vmem:[%s2688_s2 + $0x70] sm:$0xff] }
 0xb96   :  { %1942 = vmatpush.xpose.msk.msrb.mxu0 %vm753_vm13, %v1939_v34 }
 0xb97   :  { %v1277_v59 = vmul.f32 %v2039_v50, %v1276_v56  ;;  %1913 = vmatmul.msk.f32.vlgmr.msrb.gmra.mxu3 %vm239_vm9, %v1273_v57 }
 0xb99   :  { %v1278_v61 = vadd.f32 %v2039_v50, %v1277_v59 }
 0xb9a   :  { %1943 = vmatpush.xpose.msk.msrb.mxu0 %vm753_vm13, %v1938_v27 }
 0xb9b   :  { %v1282_v1 = vsel %vm1281_vm1, %v2039_v50, %v1278_v61  ;;  %v1989_v61 = vld [vmem:[%s2689_s3 + $0xa] ss:$0 sm:$0xff] }
 0xb9c   :  { %v1287_v3 = vsel %vm1284_vm2, %v1286_v62, %v1282_v1 }
 0xb9d   :  { %v1288_v4 = vmul.f32 %v2035_v36, %v1287_v3 }
 0xb9e   :  { %1944 = vmatpush.xpose.msk.msrb.mxu0 %vm753_vm13, %v1937_v60  ;;  %v1567_v60 = vld [vmem:[%s2689_s3 + $0x28] sm:$0xff] }
 0xb9f   :  { %1914 = vmatmul.msk.f32.vlgmr.msra.gmra.mxu0 %vm239_vm9, %v1288_v4 }
 0xc1a   :  { %v1309_v5 = vpop.f32.mrf.mxu3 }
 0xc1b   :  { %1923 = vmatmul.msk.f32.vlgmr.msrb.gmra.mxu1 %vm178_vm8, %v1309_v5 }
 0xc1c   :  { %v1332_v7 = vpop.f32.mrf.mxu0 }
 0xc23   :  { %1924 = vmatmul.msk.f32.gmra.mxu1 %vm178_vm8, %v1332_v7 }
 0xc98   :  { %v1375_v9 = vpop.f32.mrf.mxu1 }
 0xc99   :  { %v1417_v13 = vadd.f32 %v1416_v8, %v1375_v9  ;;  %v1990_v8 = vld [vmem:[%s2689_s3 + $0xb] ss:$0 sm:$0xff] }
 0xc9b   :  { %v2569_v15 = vadd.f32 %v1417_v13, %v2380_v14 }
 0xc9d   :  { %v1424_v17 = vsel %vm31_vm0, %v2569_v15, 0.0 }
 0xc9e   :  { %1425 = vadd.xlane.f32.xlu1 %v1424_v17 }
 0xca0   :  { %v1378_v18 = vpop.f32.mrf.mxu1 }
 0xca1   :  { %v1420_v12 = vadd.f32 %v1419_v53, %v1378_v18 }
 0xca3   :  { %v2574_v0 = vadd.f32 %v1420_v12, %v2385_v19 }
 0xca5   :  { %v1427_v20 = vsel %vm31_vm0, %v2574_v0, 0.0 }
 0xca6   :  { %1428 = vadd.xlane.f32.xlu2 %v1427_v20 }
 0xd11   :  { %v1426_v22 = vpop.xlane.xlu1 %1425 }
 0xd12   :  { %v1430_v11 = vmul.f32 %v1426_v22, %v2116_v10 }
 0xd14   :  { %v1432_v14 = vsub.f32 %v2569_v15, %v1430_v11 }
 0xd16   :  { %v1434_v23 = vmul.f32 %v1432_v14, %v1432_v14 }
 0xd18   :  { %v1436_v24 = vsel %vm31_vm0, %v1434_v23, 0.0 }
 0xd19   :  { %1437 = vadd.xlane.f32.xlu0 %v1436_v24  ;;  %v1429_v25 = vpop.xlane.xlu2 %1428 }
 0xd1a   :  { %v1431_v2 = vmul.f32 %v1429_v25, %v2116_v10 }
 0xd1c   :  { %v1433_v16 = vsub.f32 %v2574_v0, %v1431_v2 }
 0xd1e   :  { %v1435_v19 = vmul.f32 %v1433_v16, %v1433_v16 }
 0xd20   :  { %v1439_v26 = vsel %vm31_vm0, %v1435_v19, 0.0 }
 0xd21   :  { %1440 = vadd.xlane.f32.xlu1 %v1439_v26 }
 0xd8c   :  { %v1438_v32 = vpop.xlane.xlu0 %1437 }
 0xd8d   :  { %v1442_v33 = vmul.f32 %v1438_v32, %v2116_v10 }
 0xd8f   :  { %v1444_v63 = vadd.f32 1e-06, %v1442_v33 }
 0xd91   :  { %2040 = vrsqrt.f32 %v1444_v63  ;;  %vm1452_vm9 = vweird.f32 %v1444_v63 }
 0xd94   :  { %v1441_v35 = vpop.xlane.xlu1 %1440 }
 0xd95   :  { %v1443_v21 = vmul.f32 %v1441_v35, %v2116_v10 }
 0xd97   :  { %v2041_v36 = vpop.eup %2040  ;;  %v1445_v37 = vadd.f32 1e-06, %v1443_v21 }
 0xd98   :  { %v1447_v38 = vmul.f32 %v2041_v36, %v1444_v63  ;;  %vm1453_vm8 = vweird.f32 %v2041_v36 }
 0xd99   :  { %2042 = vrsqrt.f32 %v1445_v37  ;;  %vm1454_vm3 = vmor %vm1452_vm9, %vm1453_vm8  ;;  %vm1462_vm5 = vweird.f32 %v1445_v37  ;;  %vm1726_vm9 = vcmask 7168  }
 0xd9a   :  { %v1448_v39 = vmul.f32 %v2041_v36, %v1447_v38 }
 0xd9c   :  { %v1449_v40 = vmul.f32 0.5, %v1448_v39  ;;  %v1991_v39 = vld [vmem:[%s2689_s3 + $0xc] ss:$0 sm:$0xff] }
 0xd9e   :  { %v1450_v41 = vsub.f32 1.5, %v1449_v40 }
 0xd9f   :  { %v2043_v42 = vpop.eup %2042 }
 0xda0   :  { %v1451_v43 = vmul.f32 %v2041_v36, %v1450_v41  ;;  %v1457_v44 = vmul.f32 %v2043_v42, %v1445_v37  ;;  %vm1463_vm4 = vweird.f32 %v2043_v42 }
 0xda1   :  { %vm1464_vm6 = vmor %vm1462_vm5, %vm1463_vm4 }
 0xda2   :  { %v1455_v46 = vsel %vm1454_vm3, %v2041_v36, %v1451_v43  ;;  %v1458_v47 = vmul.f32 %v2043_v42, %v1457_v44 }
 0xda3   :  { %v1466_v48 = vmul.f32 %v1455_v46, %v1432_v14 }
 0xda4   :  { %v1459_v50 = vmul.f32 0.5, %v1458_v47 }
 0xda5   :  { %v1469_v51 = vmul.f32 %v1987_v45, %v1466_v48 }
 0xda6   :  { %v1460_v52 = vsub.f32 1.5, %v1459_v50 }
 0xda7   :  { %v1472_v54 = vadd.f32 %v1988_v49, %v1469_v51 }
 0xda8   :  { %v1461_v55 = vmul.f32 %v2043_v42, %v1460_v52  ;;  %v1993_v52 = vld [vmem:[%s2689_s3 + $0xe] ss:$0 sm:$0xff] }
 0xda9   :  { %1935 = vmatmul.msk.f32.vlgmr.msra.gmra.mxu3 %vm31_vm0, %v1472_v54 }
 0xdaa   :  { %v1465_v56 = vsel %vm1464_vm6, %v2043_v42, %v1461_v55  ;;  %v1992_v42 = vld [vmem:[%s2689_s3 + $0xd] ss:$0 sm:$0xff] }
 0xdab   :  { %v1467_v57 = vmul.f32 %v1465_v56, %v1433_v16 }
 0xdad   :  { %v1470_v58 = vmul.f32 %v1987_v45, %v1467_v57 }
 0xdaf   :  { %v1473_v59 = vadd.f32 %v1988_v49, %v1470_v58 }
 0xdb1   :  { %1936 = vmatmul.msk.f32.gmra.mxu3 %vm31_vm0, %v1473_v59 }
 0xe2c   :  { %v1503_v62 = vpop.f32.mrf.mxu3 }
 0xe2d   :  { %v1504_v1 = vadd.f32 %v1989_v61, %v1503_v62  ;;  %v1957_v62 = vfloor.f32 %v1567_v60 }
 0xe2f   :  { %v1509_v3 = vmax.f32 %v1504_v1, 0.0  ;;  %v2073_v1 = vmov 0  }
 0xe30   :  { %1976 = vset.pattern.permute.xlu1 %v2073_v1  ;;  %1977 = vset.pattern.permute.xlu2 %v2073_v1 }
 0xe31   :  { %1945 = vmatmul.msk.f32.vlgmr.msrb.gmra.mxu0 %vm753_vm13, %v1509_v3  ;;  %1978 = vset.pattern.permute.xlu0 %v2073_v1 }
 0xe34   :  { %v1506_v4 = vpop.f32.mrf.mxu3 }
 0xe35   :  { %v1507_v5 = vadd.f32 %v1989_v61, %v1506_v4  ;;  %v1956_v61 = vceil.f32 %v1567_v60 }
 0xe37   :  { %v1510_v7 = vmax.f32 %v1507_v5, 0.0 }
 0xe39   :  { %1946 = vmatmul.msk.f32.gmra.mxu0 %vm753_vm13, %v1510_v7 }
 0xeae   :  { %v1551_v9 = vpop.f32.mrf.mxu0 }
 0xeaf   :  { %v1557_v13 = vadd.f32 %v1551_v9, %v2569_v15 }
 0xeb1   :  { %v1560_v17 = vadd.f32 %v1990_v8, %v1557_v13 }
 0xeb3   :  { %v1571_v53 = vsel %vm31_vm0, %v1560_v17, 0.0 }
 0xeb4   :  { %1572 = vadd.xlane.f32.xlu2 %v1571_v53 }
 0xeb6   :  { %v1554_v18 = vpop.f32.mrf.mxu0 }
 0xeb7   :  { %v1558_v12 = vadd.f32 %v1554_v18, %v2574_v0  ;;  %v1566_v0 = vld [vmem:[%s2689_s3 + $0x20] sm:$0x3] }
 0xeb8   :  { %1947 = vmatpush.xpose.msk.msra.mxu1 %vm31_vm0, %v1566_v0 }
 0xeb9   :  { %v1561_v20 = vadd.f32 %v1990_v8, %v1558_v12 }
 0xebb   :  { %v1574_v22 = vsel %vm31_vm0, %v1561_v20, 0.0 }
 0xebc   :  { %1575 = vadd.xlane.f32.xlu0 %v1574_v22  ;;  %1948 = vmatpush.xpose.msk.msra.mxu1 %vm31_vm0, %v1565_v28  ;;  %v1568_v22 = vld [vmem:[%s2689_s3 + $0x30] sm:$0xff] }
 0xebd   :  { %vm1960_vm1 = vcmp.lt.s32.totalorder %v1568_v22, 0 }
 0xf27   :  { %v1573_v11 = vpop.xlane.xlu2 %1572 }
 0xf28   :  { %v1577_v14 = vmul.f32 %v1573_v11, %v2116_v10  ;;  %v1961_v11 = vceil.f32 %v1568_v22 }
 0xf2a   :  { %v1579_v23 = vsub.f32 %v1560_v17, %v1577_v14  ;;  %v1962_v14 = vfloor.f32 %v1568_v22 }
 0xf2c   :  { %v1581_v24 = vmul.f32 %v1579_v23, %v1579_v23 }
 0xf2e   :  { %v1583_v25 = vsel %vm31_vm0, %v1581_v24, 0.0 }
 0xf2f   :  { %v1576_v2 = vpop.xlane.xlu0 %1575  ;;  %1584 = vadd.xlane.f32.xlu1 %v1583_v25 }
 0xf30   :  { %v1578_v15 = vmul.f32 %v1576_v2, %v2116_v10  ;;  %v1684_v2 = vlaneseq }
 0xf32   :  { %v1580_v16 = vsub.f32 %v1561_v20, %v1578_v15  ;;  %v1685_v15 = vand.u32 127, %v1684_v2 }
 0xf34   :  { %v1582_v19 = vmul.f32 %v1580_v16, %v1580_v16 }
 0xf36   :  { %v1586_v26 = vsel %vm31_vm0, %v1582_v19, 0.0 }
 0xf37   :  { %1587 = vadd.xlane.f32.xlu2 %v1586_v26 }
 0xfa2   :  { %v1585_v29 = vpop.xlane.xlu1 %1584 }
 0xfa3   :  { %v1589_v30 = vmul.f32 %v1585_v29, %v2116_v10  ;;  %v2074_v29 = vmov 0.0  }
 0xfa5   :  { %v1591_v31 = vadd.f32 1e-06, %v1589_v30 }
 0xfa7   :  { %2044 = vrsqrt.f32 %v1591_v31  ;;  %vm1599_vm7 = vweird.f32 %v1591_v31 }
 0xfaa   :  { %v1588_v32 = vpop.xlane.xlu2 %1587 }
 0xfab   :  { %v1590_v33 = vmul.f32 %v1588_v32, %v2116_v10 }
 0xfad   :  { %v2045_v63 = vpop.eup %2044  ;;  %v1592_v6 = vadd.f32 1e-06, %v1590_v33 }
 0xfae   :  { %v1594_v34 = vmul.f32 %v2045_v63, %v1591_v31  ;;  %vm1600_vm13 = vweird.f32 %v2045_v63 }
 0xfaf   :  { %2046 = vrsqrt.f32 %v1592_v6  ;;  %vm1601_vm10 = vmor %vm1599_vm7, %vm1600_vm13  ;;  %vm1609_vm12 = vweird.f32 %v1592_v6 }
 0xfb0   :  { %v1595_v35 = vmul.f32 %v2045_v63, %v1594_v34 }
 0xfb2   :  { %v1596_v21 = vmul.f32 0.5, %v1595_v35 }
 0xfb4   :  { %v1597_v36 = vsub.f32 1.5, %v1596_v21 }
 0xfb5   :  { %v2047_v37 = vpop.eup %2046 }
 0xfb6   :  { %v1598_v27 = vmul.f32 %v2045_v63, %v1597_v36  ;;  %v1604_v38 = vmul.f32 %v2047_v37, %v1592_v6  ;;  %vm1610_vm11 = vweird.f32 %v2047_v37 }
 0xfb7   :  { %vm1611_vm14 = vmor %vm1609_vm12, %vm1610_vm11 }
 0xfb8   :  { %v1602_v40 = vsel %vm1601_vm10, %v2045_v63, %v1598_v27  ;;  %v1605_v41 = vmul.f32 %v2047_v37, %v1604_v38 }
 0xfb9   :  { %v1613_v10 = vmul.f32 %v1602_v40, %v1579_v23  ;;  %v1963_v23 = vsel %vm1960_vm1, %v1961_v11, %v1962_v14  ;;  %v1569_v40 = vld [vmem:[%s2689_s3 + $0x38] sm:$0xff] }
 0xfba   :  { %v1606_v43 = vmul.f32 0.5, %v1605_v41  ;;  %v1964_v24 = vcvt.f32.s32 %v1963_v23  ;;  %v1570_v41 = vld [vmem:[%s2689_s3 + $0x40] sm:$0xff] }
 0xfbb   :  { %v1616_v44 = vmul.f32 %v1991_v39, %v1613_v10  ;;  %v1739_v10 = vsel %vm1726_vm9, %v1569_v40, 0.0 }
 0xfbc   :  { %v1607_v45 = vsub.f32 1.5, %v1606_v43 }
 0xfbd   :  { %v1619_v46 = vadd.f32 %v1992_v42, %v1616_v44 }
 0xfbe   :  { %v1608_v47 = vmul.f32 %v2047_v37, %v1607_v45 }
 0xfbf   :  { %1949 = vmatmul.msk.f32.vlgmr.msra.gmra.mxu1 %vm31_vm0, %v1619_v46 }
 0xfc0   :  { %v1612_v48 = vsel %vm1611_vm14, %v2047_v37, %v1608_v47 }
 0xfc1   :  { %v1614_v49 = vmul.f32 %v1612_v48, %v1580_v16 }
 0xfc3   :  { %v1617_v50 = vmul.f32 %v1991_v39, %v1614_v49 }
 0xfc5   :  { %v1620_v51 = vadd.f32 %v1992_v42, %v1617_v50  ;;  %v1740_v42 = vsel %vm1726_vm9, %v1570_v41, 0.0 }
 0xfc6   :  { %v1741_v43 = vadd.f32 %v1740_v42, %v1739_v10 }
 0xfc7   :  { %1950 = vmatmul.msk.f32.gmra.mxu1 %vm31_vm0, %v1620_v51  ;;  %vm1955_vm0 = vcmp.lt.s32.totalorder %v1567_v60, 0 }
 0xfc8   :  { %v1958_v3 = vsel %vm1955_vm0, %v1956_v61, %v1957_v62 }
 0xfc9   :  { %v1959_v4 = vcvt.f32.s32 %v1958_v3 }
0x103c   :  { %v1651_v54 = vpop.f32.mrf.mxu1 }
0x103d   :  { %v1652_v55 = vadd.f32 %v1993_v52, %v1651_v54 }
0x103f   :  { %v1658_v56 = vsel %vm1657_vm15, %v1652_v55, -inf }
0x1040   :  { %1659 = vmax.xlane.f32.xlu0 %v1658_v56 }
0x1044   :  { %v1654_v57 = vpop.f32.mrf.mxu1 }
0x1045   :  { %v1655_v58 = vadd.f32 %v1993_v52, %v1654_v57 }
0x1047   :  { %v1661_v59 = vsel %vm1657_vm15, %v1655_v58, -inf }
0x1048   :  { %1662 = vmax.xlane.f32.xlu1 %v1661_v59 }
0x1061   :  { %1689 = vperm.xlu1 %1976, %v1959_v4  }
0x10b3   :  { %v1660_v5 = vpop.xlane.xlu0 %1659 }
0x10b4   :  { %v1664_v7 = vsub.f32 %v1652_v55, %v1660_v5 }
0x10b6   :  { %v1666_v8 = vmul.f32 1.442695, %v1664_v7 }
0x10b8   :  { %2048 = vpow2.f32 %v1666_v8 }
0x10bb   :  { %v1663_v9 = vpop.xlane.xlu1 %1662 }
0x10bc   :  { %v1665_v13 = vsub.f32 %v1655_v58, %v1663_v9 }
0x10be   :  { %v2049_v17 = vpop.eup %2048  ;;  %v1668_v53 = vmul.f32 1.442695, %v1665_v13 }
0x10bf   :  { %v1670_v18 = vsel %vm1657_vm15, %v2049_v17, 0.0 }
0x10c0   :  { %2050 = vpow2.f32 %v1668_v53  ;;  %1671 = vadd.xlane.f32.xlu2 %v1670_v18 }
0x10c6   :  { %v2051_v12 = vpop.eup %2050 }
0x10c7   :  { %v1673_v20 = vsel %vm1657_vm15, %v2051_v12, 0.0 }
0x10c8   :  { %1674 = vadd.xlane.f32.xlu0 %v1673_v20 }
0x10d3   :  { %v1690_v16 = vpop.permute.xlu1 %1689 }
0x10d4   :  { %vm1694_vm2 = vcmp.eq.s32.totalorder %v1685_v15, %v1690_v16 }
0x10d5   :  { %v1951_v30 = vsel %vm1694_vm2, 1.0, %v2074_v29 }
0x10d8   :  { %1692 = vperm.xlu2 %1977, %v1964_v24  }
0x1133   :  { %v1672_v25 = vpop.xlane.xlu2 %1671 }
0x1134   :  { %2052 = vlog2.f32 %v1672_v25 }
0x113a   :  { %v2053_v19 = vpop.eup %2052 }
0x113b   :  { %v1677_v26 = vmul.f32 0.6931472, %v2053_v19  ;;  %v1675_v0 = vpop.xlane.xlu0 %1674  ;;  %v1693_v32 = vpop.permute.xlu2 %1692 }
0x113c   :  { %2054 = vlog2.f32 %v1675_v0  ;;  %vm1695_vm8 = vcmp.eq.s32.totalorder %v1685_v15, %v1693_v32 }
0x113d   :  { %v1680_v28 = vadd.f32 %v1677_v26, %v1660_v5  ;;  %v1952_v21 = vsel %vm1695_vm8, 1.0, %v2074_v29 }
0x113f   :  { %v1682_v31 = vsub.f32 %v1652_v55, %v1680_v28 }
0x1141   :  { %v1700_v33 = vmul.f32 %v1951_v30, %v1682_v31  ;;  %v1708_v39 = vsel %vm1657_vm15, %v1682_v31, 0.0 }
0x1142   :  { %v2055_v63 = vpop.eup %2054 }
0x1143   :  { %v1679_v6 = vmul.f32 0.6931472, %v2055_v63  ;;  %v1702_v34 = vsel %vm1657_vm15, %v1700_v33, 0.0 }
0x1144   :  { %1703 = vadd.xlane.f32.xlu0 %v1702_v34 }
0x1145   :  { %v1681_v35 = vadd.f32 %v1679_v6, %v1663_v9 }
0x1147   :  { %v1683_v36 = vsub.f32 %v1655_v58, %v1681_v35 }
0x1149   :  { %v1711_v37 = vsel %vm1657_vm15, %v1683_v36, 0.0  ;;  %v1701_v27 = vmul.f32 %v1952_v21, %v1683_v36 }
0x114a   :  { %1712 = vadd.xlane.f32.xlu2 %v1711_v37 }
0x114b   :  { %v1705_v38 = vsel %vm1657_vm15, %v1701_v27, 0.0 }
0x114c   :  { %1706 = vadd.xlane.f32.xlu0 %v1705_v38 }
0x1154   :  { %1709 = vadd.xlane.f32.xlu0 %v1708_v39 }
0x115c   :  { %1742 = vadd.xlane.f32.xlu0 %v1741_v43 }
0x11b7   :  { %v1704_v44 = vpop.xlane.xlu0 %1703 }
0x11b8   :  { %v1714_v52 = vmul.f32 0.8888889, %v1704_v44 }
0x11bd   :  { %v1713_v45 = vpop.xlane.xlu2 %1712 }
0x11be   :  { %v1717_v47 = vmul.f32 0.011111111, %v1713_v45 }
0x11bf   :  { %v1707_v46 = vpop.xlane.xlu0 %1706 }
0x11c0   :  { %v1715_v48 = vmul.f32 0.8888889, %v1707_v46 }
0x11c2   :  { %v1719_v49 = vadd.f32 %v1717_v47, %v1715_v48 }
0x11c4   :  { %v1721_v50 = vsub.f32 0.0, %v1719_v49 }
0x11c6   :  { %v1954_v55 = vadd.f32 -0.5448054, %v1721_v50 }
0x11c7   :  { %v1710_v51 = vpop.xlane.xlu0 %1709 }
0x11c8   :  { %v1716_v54 = vmul.f32 0.011111111, %v1710_v51  ;;  %v1725_v59 = vmul.f32 %v1954_v55, %v1570_v41 }
0x11ca   :  { %v1718_v56 = vadd.f32 %v1716_v54, %v1714_v52  ;;  %v1728_v62 = vsel %vm1726_vm9, %v1725_v59, 0.0 }
0x11cc   :  { %v1720_v57 = vsub.f32 0.0, %v1718_v56 }
0x11ce   :  { %v1953_v58 = vadd.f32 -0.5448054, %v1720_v57 }
0x11cf   :  { %v1743_v3 = vpop.xlane.xlu0 %1742 }
0x11d0   :  { %v1724_v60 = vmul.f32 %v1953_v58, %v1569_v40  ;;  %v1744_v4 = vrot.slane %v1743_v3, 4 }
0x11d2   :  { %v1727_v61 = vsel %vm1726_vm9, %v1724_v60, 0.0  ;;  %v1745_v5 = vadd.f32 %v1744_v4, %v1743_v3 }
0x11d3   :  { %v1729_v1 = vadd.f32 %v1728_v62, %v1727_v61 }
0x11d4   :  { %v1746_v7 = vrot.slane %v1745_v5, 2 }
0x11d5   :  { %1730 = vadd.xlane.f32.xlu1 %v1729_v1 }
0x11d6   :  { %v1747_v17 = vadd.f32 %v1746_v7, %v1745_v5 }
0x11d8   :  { %v1748_v12 = vrot.slane %v1747_v17, 1 }
0x11da   :  { %v1749_v11 = vadd.f32 %v1748_v12, %v1747_v17 }
0x1248   :  { %v1731_v8 = vpop.xlane.xlu1 %1730 }
0x1249   :  { %v1732_v9 = vrot.slane %v1731_v8, 4 }
0x124b   :  { %v1733_v13 = vadd.f32 %v1732_v9, %v1731_v8 }
0x124d   :  { %v1734_v53 = vrot.slane %v1733_v13, 2 }
0x124f   :  { %v1735_v18 = vadd.f32 %v1734_v53, %v1733_v13 }
0x1251   :  { %v1736_v20 = vrot.slane %v1735_v18, 1 }
0x1253   :  { %v1737_v22 = vadd.f32 %v1736_v20, %v1735_v18 }
0x1255   :  { %1965 = vpush %v1737_v22 }
0x1256   :  { %1967 = vpush %v1749_v11 }
0x1286   :  { %s1966_s3 = spop %1965 }
0x1287   :  { %s1968_s30 = spop %1967 }
0x1288   :  { %s1751_s6 = smax.f32 %s2075_s5, %s1968_s30 }
0x1289   :  { %v1752_v14 = vstv %s1751_s6 }
0x128a   :  { %2056 = vrcp.f32 %v1752_v14  ;;  %v1764_v2 = vand.u32 2147483648, %v1752_v14  ;;  %v1762_v16 = vand.u32 2147483647, %v1752_v14  ;;  %vm1758_vm4 = vweird.f32 %v1752_v14 }
0x128c   :  { %v1765_v26 = vor.u32 1.1754944e-38, %v1764_v2  ;;  %vm1763_vm6 = vcmp.eq.f32.partialorder %v1762_v16, 8.507059e+37 }
0x1290   :  { %v2057_v23 = vpop.eup %2056 }
0x1291   :  { %v1754_v24 = vmul.f32 %v2057_v23, %v1752_v14  ;;  %vm1759_vm3 = vweird.f32 %v2057_v23 }
0x1292   :  { %vm1760_vm5 = vmor %vm1758_vm4, %vm1759_vm3 }
0x1293   :  { %v1755_v25 = vsub.f32 1.0, %v1754_v24 }
0x1295   :  { %v1756_v15 = vmul.f32 %v2057_v23, %v1755_v25 }
0x1297   :  { %v1757_v19 = vadd.f32 %v2057_v23, %v1756_v15 }
0x1299   :  { %v1761_v0 = vsel %vm1760_vm5, %v2057_v23, %v1757_v19 }
0x129a   :  { %v1766_v28 = vsel %vm1763_vm6, %v1765_v26, %v1761_v0 }
0x129b   :  { %1969 = vpush %v1766_v28 }
0x12cc   :  { %s1970_s10 = spop %1969 }
0x12cd   :  { %s1768_s11 = smul.f32 %s1970_s10, %s1966_s3 }
0x12cf   :  { %1770 = sst [smem:[#allocation2]] %s1768_s11 }
0x12d0   :  { %1779 = dma.smem_to_hbm %s2076_s12, 16, %s1777_s9, [#allocation3]  }
0x12d1   :  { %2070 = dma.done.wait [#allocation3], 16  }
0x12d2   :  { %2071 = vsyncadd [#allocation3], 4294967280 }
0x12d3   :  { %1784 = sfence }
0x12d4   :  { %1785 = vsyncpa [#allocation3], 1 }

</bundles_post_ra>
